<compile_context>
chip_gen: v7x
topology: tpu7x:2x2x1
jax: 0.10.0
libtpu: 0.0.40
codegen_flags: <defaults>
</compile_context>

<pallas_src>
import functools

import jax
import jax.numpy as jnp
from jax.experimental import pallas as pl
from jax.experimental.pallas import tpu as pltpu


# ----------------------------------------------------------------------------
# Host-side prep (no gathers): zero-pad + stride phase split via
# pad/reshape/transpose, and flattened per-(phase, tap) weight matrix.
# ----------------------------------------------------------------------------
def build_phase_windows(x_ncl, *, kernel_size, stride, padding):
    """x: (B, C, L) -> xs: (B, S, C, L_win), xs[b, r, c, t] = x_pad[b, c, S*t + r].

    Pure pad + reshape + transpose -- no gather and no index tensor."""
    B, C, L = x_ncl.shape
    S = stride
    Q = -(-kernel_size // S)                       # ceil(K / S)
    L_out = (L + 2 * padding - kernel_size) // S + 1
    L_win = L_out + Q - 1
    total = S * L_win                              # padded length the kernel reads
    pad_right = total - L - padding
    assert pad_right >= 0
    xp = jnp.pad(x_ncl, ((0, 0), (0, 0), (padding, pad_right)))
    xs = xp.reshape(B, C, L_win, S).transpose(0, 3, 1, 2)   # (B, S, C, L_win)
    return xs, L_out, Q


def prep_conv_weight(w_oik, stride):
    """PyTorch (Cout, Cin, K) -> (Cout, S*Q*Cin); column order (r, q, c) matches
    the kernel's im2col rows.  Missing taps (K % S != 0) are zero-padded."""
    Cout, Cin, K = w_oik.shape
    S = stride
    Q = -(-K // S)
    w_pad = jnp.pad(w_oik, ((0, 0), (0, 0), (0, S * Q - K)))  # (Cout, Cin, S*Q)
    w_r = w_pad.reshape(Cout, Cin, Q, S)                      # [o, c, q, r] = w[o, c, S*q + r]
    return w_r.transpose(0, 3, 2, 1).reshape(Cout, S * Q * Cin)


def _pick_time_tile(L_out, fold_shuffle):
    # Largest lane-dense tile dividing L_out; the in-kernel PhaseShuffle needs
    # the whole time axis resident in one tile, so it forces nt == 1.
    if fold_shuffle or L_out <= 1024:
        return L_out, 1
    for cand in (1024, 512, 256, 128):
        if L_out % cand == 0:
            return cand, L_out // cand
    return L_out, 1


def _pick_cout_tile(Cout):
    # Cap the output-channel tile so the f32 accumulator and the weight block
    # stay inside vreg/VMEM budgets at real WaveGAN sizes (Cout up to 1024).
    if Cout <= 256:
        return Cout, 1
    for cand in (256, 128, 64):
        if Cout % cand == 0:
            return cand, Cout // cand
    return Cout, 1


@functools.lru_cache(maxsize=None)
def _vmem_limit_bytes():
    # Generation-aware scoped-VMEM limit (v7x has 64 MiB physical vs 128 MiB).
    try:
        cap = pltpu.get_tpu_info().vmem_capacity_bytes
    except Exception:
        cap = 64 * 1024 * 1024
    return int(min(cap // 2, 64 * 1024 * 1024))


# ----------------------------------------------------------------------------
# Pallas kernel: strided Conv1d (all taps in one MXU contraction) + bias +
# LeakyReLU + (optionally) this layer's PhaseShuffle, all fused.
# ----------------------------------------------------------------------------
def _conv_kernel(shift_ref, x_ref, w_ref, b_ref, o_ref, *scratch,
                 S, Q, TL, nt, neg_slope, F, fold_shuffle):
    # shift_ref: SMEM (B,) int32 -- this layer's per-example PhaseShuffle shift
    # x_ref:  (S, Cin, L_win)    -- phase-split, zero-padded input window
    # w_ref:  (TCout, S*Q*Cin)   -- flattened taps
    # b_ref:  (TCout, 1)
    # o_ref:  (TCout, TL)        -- lane-dense output tile (time on lanes)
    # scratch[0]: VMEM (S*Q*Cin, TL)          im2col operand
    # scratch[1]: VMEM (TCout, TL + 2F)       reflect-extended tile (if folding)
    col_ref = scratch[0]
    cin = x_ref.shape[1]
    t0 = 0 if nt == 1 else pl.multiple_of(pl.program_id(2) * TL, TL)

    # Build the (S*Q*Cin, TL) operand from S*Q contiguous lane slices
    # (Cin sits on sublanes -> each slice is a clean vld, no relayout).
    for r in range(S):
        for q in range(Q):
            row = (r * Q + q) * cin
            col_ref[pl.ds(row, cin), :] = (
                x_ref[r, :, pl.ds(t0 + q, TL)].astype(col_ref.dtype))

    # Single MXU contraction over (taps x Cin); f32 accumulation.
    acc = jnp.dot(w_ref[...], col_ref[...], preferred_element_type=jnp.float32)
    acc = acc + b_ref[...]                                         # bias epilogue
    acc = jnp.where(acc >= 0.0, acc, jnp.float32(neg_slope) * acc)  # LeakyReLU

    if fold_shuffle:
        # PhaseShuffle (reflect padding), folded into the epilogue while the
        # tile is still in VMEM: build [y[F]..y[1] | y | y[TL-2]..y[TL-1-F]]
        # in scratch, then select the window offset by the SMEM shift.
        shuf_ref = scratch[1]
        shuf_ref[:, F:F + TL] = acc
        for i in range(F):
            shuf_ref[:, i:i + 1] = acc[:, F - i:F - i + 1]                       # left reflect
            shuf_ref[:, F + TL + i:F + TL + i + 1] = acc[:, TL - 2 - i:TL - 1 - i]  # right reflect
        shift = shift_ref[pl.program_id(0)]
        out = shuf_ref[:, F:F + TL]                    # shift == 0 case
        for s in range(-F, F + 1):                     # 2F+1 static-slice selects
            if s != 0:
                out = jnp.where(shift == s, shuf_ref[:, F - s:F - s + TL], out)
        o_ref[...] = out.astype(o_ref.dtype)
    else:
        o_ref[...] = acc.astype(o_ref.dtype)


def conv1d_lrelu_shuffle_pallas(xs, w_mat, bias, shifts, *, L_out, S, Q,
                                neg_slope, shift_factor, fold_shuffle,
                                matmul_dtype=jnp.float32):
    """xs: (B, S, Cin, L_win); w_mat: (Cout, S*Q*Cin); bias: (Cout,);
    shifts: (B,) int32 PhaseShuffle shifts for THIS layer (unused if not folding)."""
    B, S_, Cin, L_win = xs.shape
    assert S_ == S
    Cout, SQC = w_mat.shape
    assert SQC == S * Q * Cin
    TL, nt = _pick_time_tile(L_out, fold_shuffle)
    TCout, n_co = _pick_cout_tile(Cout)
    F = shift_factor

    b2 = bias.reshape(Cout, 1).astype(jnp.float32)
    w_mat = w_mat.astype(matmul_dtype)

    kern = functools.partial(_conv_kernel, S=S, Q=Q, TL=TL, nt=nt,
                             neg_slope=neg_slope, F=F, fold_shuffle=fold_shuffle)
    scratch = [pltpu.VMEM((SQC, TL), matmul_dtype)]
    if fold_shuffle:
        scratch.append(pltpu.VMEM((TCout, TL + 2 * F), jnp.float32))

    flops = 2 * B * Cout * SQC * L_out
    bytes_accessed = (xs.size * xs.dtype.itemsize
                      + w_mat.size * w_mat.dtype.itemsize
                      + b2.size * 4 + B * Cout * L_out * 4)

    return pl.pallas_call(
        kern,
        out_shape=jax.ShapeDtypeStruct((B, Cout, L_out), jnp.float32),
        grid_spec=pltpu.PrefetchScalarGridSpec(
            num_scalar_prefetch=1,
            grid=(B, n_co, nt),
            in_specs=[
                pl.BlockSpec((None, S, Cin, L_win), lambda b, co, t, sh: (b, 0, 0, 0)),
                pl.BlockSpec((TCout, SQC), lambda b, co, t, sh: (co, 0)),
                pl.BlockSpec((TCout, 1), lambda b, co, t, sh: (co, 0)),
            ],
            out_specs=pl.BlockSpec((None, TCout, TL), lambda b, co, t, sh: (b, co, t)),
            scratch_shapes=scratch),
        compiler_params=pltpu.CompilerParams(
            dimension_semantics=("parallel", "parallel", "parallel"),
            vmem_limit_bytes=_vmem_limit_bytes()),
        cost_estimate=pl.CostEstimate(flops=flops, transcendentals=0,
                                      bytes_accessed=bytes_accessed),
    )(shifts, xs.astype(jnp.float32), w_mat, b2)


# ----------------------------------------------------------------------------
# Pallas kernel: final Linear (feat -> 1) as multiply + reduce
# ----------------------------------------------------------------------------
def _fc_kernel(x_ref, w_ref, b_ref, o_ref):
    prod = x_ref[...] * w_ref[...][None, :, :]      # (B, C, L)
    s = jnp.sum(prod, axis=2)                       # lane reduce    -> (B, C)
    s = jnp.sum(s, axis=1, keepdims=True)           # sublane reduce -> (B, 1)
    o_ref[...] = (s + b_ref[...]).astype(o_ref.dtype)


def fc_pallas(x_bcl, w_cl, bias):
    B, C, L = x_bcl.shape
    b2 = bias.reshape(1, 1).astype(jnp.float32)
    # NOTE: at these sizes the FC is launch-bound; it could be folded into the
    # last conv's epilogue, but is kept as its own tiny kernel for clarity.
    return pl.pallas_call(
        _fc_kernel,
        out_shape=jax.ShapeDtypeStruct((B, 1), jnp.float32),
        grid=(1,),
        in_specs=[
            pl.BlockSpec((B, C, L), lambda i: (0, 0, 0)),
            pl.BlockSpec((C, L), lambda i: (0, 0)),
            pl.BlockSpec((1, 1), lambda i: (0, 0)),
        ],
        out_specs=pl.BlockSpec((B, 1), lambda i: (0, 0)),
        compiler_params=pltpu.CompilerParams(dimension_semantics=("arbitrary",)),
    )(x_bcl.astype(jnp.float32), w_cl.astype(jnp.float32), b2)


# ----------------------------------------------------------------------------
# Reference-only PhaseShuffle on NCL (reflect padding, per-example shift)
# ----------------------------------------------------------------------------
def phase_shuffle_ncl(x, shifts):
    B, C, L = x.shape
    i = jnp.arange(L)
    idx = jnp.abs(i[None, :] - shifts[:, None])
    idx = (L - 1) - jnp.abs((L - 1) - idx)
    idx_full = jnp.broadcast_to(idx[:, None, :], (B, C, L))
    return jnp.take_along_axis(x, idx_full, axis=2)


# ----------------------------------------------------------------------------
# Parameters (deterministic, PyTorch-default-style uniform init)
# ----------------------------------------------------------------------------
def init_params(key, input_size, input_channels, n_layers, init_channels,
                kernel_size):
    params = {"convs": []}
    in_ch = input_channels
    out_ch = init_channels
    for _ in range(n_layers):
        key, kw, kb = jax.random.split(key, 3)
        fan_in = in_ch * kernel_size
        bound = 1.0 / (fan_in ** 0.5)
        w = jax.random.uniform(kw, (out_ch, in_ch, kernel_size), jnp.float32,
                               -bound, bound)
        b = jax.random.uniform(kb, (out_ch,), jnp.float32, -bound, bound)
        params["convs"].append((w, b))
        in_ch = out_ch
        out_ch = out_ch * 2
    feat = in_ch * (input_size // 2 ** n_layers)
    key, kw, kb = jax.random.split(key, 3)
    bound = 1.0 / (feat ** 0.5)
    params["fc_w"] = jax.random.uniform(kw, (feat, 1), jnp.float32, -bound, bound)
    params["fc_b"] = jax.random.uniform(kb, (1,), jnp.float32, -bound, bound)
    return params


# ----------------------------------------------------------------------------
# Forward pass (Pallas) and pure-JAX reference
# ----------------------------------------------------------------------------
def wavegan_discriminator_fwd(params, x_ncl, shifts_per_layer, *, kernel_size,
                              stride, padding, shift_factor, neg_slope=0.2,
                              matmul_dtype=jnp.float32):
    x = x_ncl                                   # (B, C, L): NCL, time on lanes
    B = x.shape[0]
    fold_shuffle = shift_factor > 0
    for li, (w, b) in enumerate(params["convs"]):
        xs, L_out, Q = build_phase_windows(x, kernel_size=kernel_size,
                                           stride=stride, padding=padding)
        if fold_shuffle:
            # Reflect-style PhaseShuffle needs |shift| <= L_out - 1 and the
            # in-kernel halo needs L_out > shift_factor.
            assert L_out > shift_factor, "PhaseShuffle needs L_out > shift_factor"
            layer_shifts = shifts_per_layer[li].astype(jnp.int32)
        else:
            layer_shifts = jnp.zeros((B,), jnp.int32)
        w_mat = prep_conv_weight(w, stride)
        x = conv1d_lrelu_shuffle_pallas(
            xs, w_mat, b, layer_shifts, L_out=L_out, S=stride, Q=Q,
            neg_slope=neg_slope, shift_factor=shift_factor,
            fold_shuffle=fold_shuffle, matmul_dtype=matmul_dtype)
    _, C_f, L_f = x.shape
    w_fc = params["fc_w"].reshape(C_f, L_f)     # torch view(B, -1) order == (C, L)
    # TODO(synk): n_classes > 0 projection-discriminator branch and
    # spectral_norm are not exercised by the default forward and are omitted.
    return fc_pallas(x, w_fc, params["fc_b"])   # (B, 1)


def reference_fwd(params, x_ncl, shifts_per_layer, *, stride, padding,
                  neg_slope=0.2):
    x = x_ncl
    for li, (w, b) in enumerate(params["convs"]):
        x = jax.lax.conv_general_dilated(
            x, w, window_strides=(stride,), padding=[(padding, padding)],
            dimension_numbers=("NCH", "OIH", "NCH"))
        x = x + b[None, :, None]
        if shifts_per_layer is not None:
            x = phase_shuffle_ncl(x, shifts_per_layer[li])
        x = jnp.where(x >= 0.0, x, neg_slope * x)
    B = x.shape[0]
    x_flat = x.reshape(B, -1)
    return x_flat @ params["fc_w"] + params["fc_b"].reshape(1, -1)


if __name__ == "__main__":
    # Small config consistent with the module's constraints
    # (input_size % 2**n_layers == 0, input_size >= 2**n_layers).
    input_size = 64
    input_channels = 1
    n_layers = 3
    init_channels = 8
    kernel_size = 16
    stride = 2
    shift_factor = 2
    padding = kernel_size // 2 - 1
    neg_slope = 0.2
    B = 2

    key = jax.random.PRNGKey(0)
    key, kp, kx, ks = jax.random.split(key, 4)

    params = init_params(kp, input_size, input_channels, n_layers,
                         init_channels, kernel_size)
    x = jax.random.normal(kx, (B, input_channels, input_size), jnp.float32)

    # PhaseShuffle draws a random shift per example per layer; sample them
    # deterministically once and feed the same shifts to kernel and reference.
    shift_keys = jax.random.split(ks, n_layers)
    shifts = [jax.random.randint(shift_keys[i], (B,), -shift_factor,
                                 shift_factor + 1, dtype=jnp.int32)
              for i in range(n_layers)]

    common = dict(kernel_size=kernel_size, stride=stride, padding=padding,
                  shift_factor=shift_factor, neg_slope=neg_slope)

    # f32 MXU operands: tight check against the f32 reference.
    fwd_f32 = jax.jit(functools.partial(wavegan_discriminator_fwd,
                                        matmul_dtype=jnp.float32, **common))
    out = jax.block_until_ready(fwd_f32(params, x, shifts))
    ref = reference_fwd(params, x, shifts, stride=stride, padding=padding,
                        neg_slope=neg_slope)
    assert out.shape == (B, 1), out.shape
    assert jnp.allclose(out, ref, atol=1e-4, rtol=1e-4), (out, ref)

    # bf16 MXU operands (v6e/v7x recommendation): f32 accumulation keeps the
    # error small; checked at a correspondingly looser tolerance.
    fwd_bf16 = jax.jit(functools.partial(wavegan_discriminator_fwd,
                                         matmul_dtype=jnp.bfloat16, **common))
    out_bf16 = jax.block_until_ready(fwd_bf16(params, x, shifts))
    assert jnp.allclose(out_bf16, ref, atol=5e-2, rtol=5e-2), (out_bf16, ref)

    print("KERNEL_OK")
</pallas_src>

<mosaic_0001>
module attributes {stable_mosaic.version = 11 : i64} {
  func.func @_conv_kernel(%arg0: i32, %arg1: i32, %arg2: i32, %arg3: memref<2xi32, #tpu.memory_space<smem>>, %arg4: memref<1x2x1x39xf32, #tpu.memory_space<vmem>>, %arg5: memref<8x16xf32, #tpu.memory_space<vmem>>, %arg6: memref<8x1xf32, #tpu.memory_space<vmem>>, %arg7: memref<1x8x32xf32, #tpu.memory_space<vmem>>, %arg8: memref<16x32xf32, #tpu.memory_space<vmem>>, %arg9: memref<8x36xf32, #tpu.memory_space<vmem>>) attributes {dimension_semantics = [#tpu.dimension_semantics<parallel>, #tpu.dimension_semantics<parallel>, #tpu.dimension_semantics<parallel>], iteration_bounds = array<i64: 2, 1, 1>, scalar_prefetch = 1 : i64, scratch_operands = 2 : i64, tpu.core_type = #tpu.core_type<tc>, window_params = [{transform_indices = @transform_0, window_bounds = array<i64: 1, 2, 1, 39>}, {transform_indices = @transform_1, window_bounds = array<i64: 8, 16>}, {transform_indices = @transform_2, window_bounds = array<i64: 8, 1>}, {transform_indices = @transform_3, window_bounds = array<i64: 1, 8, 32>}]} {
    %c0 = arith.constant 0 : index
    %c0_0 = arith.constant 0 : index
    %c0_1 = arith.constant 0 : index
    %c0_2 = arith.constant 0 : index
    %0 = vector.load %arg4[%c0, %c0_0, %c0_1, %c0_2] : memref<1x2x1x39xf32, #tpu.memory_space<vmem>>, vector<1x1x1x32xf32>
    %1 = vector.shape_cast %0 : vector<1x1x1x32xf32> to vector<1x32xf32>
    %c0_3 = arith.constant 0 : index
    %c0_4 = arith.constant 0 : index
    %2 = vector.load %arg8[%c0_3, %c0_4] : memref<16x32xf32, #tpu.memory_space<vmem>>, vector<1x32xf32>
    tpu.vector_store %arg8[%c0_3, %c0_4], %1 {strides = array<i32>} : memref<16x32xf32, #tpu.memory_space<vmem>>, vector<1x32xf32>,
    %c0_5 = arith.constant 0 : index
    %c0_6 = arith.constant 0 : index
    %c0_7 = arith.constant 0 : index
    %c1 = arith.constant 1 : index
    %3 = vector.load %arg4[%c0_5, %c0_6, %c0_7, %c1] : memref<1x2x1x39xf32, #tpu.memory_space<vmem>>, vector<1x1x1x32xf32>
    %4 = vector.shape_cast %3 : vector<1x1x1x32xf32> to vector<1x32xf32>
    %c1_8 = arith.constant 1 : index
    %c0_9 = arith.constant 0 : index
    %5 = vector.load %arg8[%c1_8, %c0_9] : memref<16x32xf32, #tpu.memory_space<vmem>>, vector<1x32xf32>
    tpu.vector_store %arg8[%c1_8, %c0_9], %4 {strides = array<i32>} : memref<16x32xf32, #tpu.memory_space<vmem>>, vector<1x32xf32>,
    %c0_10 = arith.constant 0 : index
    %c0_11 = arith.constant 0 : index
    %c0_12 = arith.constant 0 : index
    %c2 = arith.constant 2 : index
    %6 = vector.load %arg4[%c0_10, %c0_11, %c0_12, %c2] : memref<1x2x1x39xf32, #tpu.memory_space<vmem>>, vector<1x1x1x32xf32>
    %7 = vector.shape_cast %6 : vector<1x1x1x32xf32> to vector<1x32xf32>
    %c2_13 = arith.constant 2 : index
    %c0_14 = arith.constant 0 : index
    %8 = vector.load %arg8[%c2_13, %c0_14] : memref<16x32xf32, #tpu.memory_space<vmem>>, vector<1x32xf32>
    tpu.vector_store %arg8[%c2_13, %c0_14], %7 {strides = array<i32>} : memref<16x32xf32, #tpu.memory_space<vmem>>, vector<1x32xf32>,
    %c0_15 = arith.constant 0 : index
    %c0_16 = arith.constant 0 : index
    %c0_17 = arith.constant 0 : index
    %c3 = arith.constant 3 : index
    %9 = vector.load %arg4[%c0_15, %c0_16, %c0_17, %c3] : memref<1x2x1x39xf32, #tpu.memory_space<vmem>>, vector<1x1x1x32xf32>
    %10 = vector.shape_cast %9 : vector<1x1x1x32xf32> to vector<1x32xf32>
    %c3_18 = arith.constant 3 : index
    %c0_19 = arith.constant 0 : index
    %11 = vector.load %arg8[%c3_18, %c0_19] : memref<16x32xf32, #tpu.memory_space<vmem>>, vector<1x32xf32>
    tpu.vector_store %arg8[%c3_18, %c0_19], %10 {strides = array<i32>} : memref<16x32xf32, #tpu.memory_space<vmem>>, vector<1x32xf32>,
    %c0_20 = arith.constant 0 : index
    %c0_21 = arith.constant 0 : index
    %c0_22 = arith.constant 0 : index
    %c4 = arith.constant 4 : index
    %12 = vector.load %arg4[%c0_20, %c0_21, %c0_22, %c4] : memref<1x2x1x39xf32, #tpu.memory_space<vmem>>, vector<1x1x1x32xf32>
    %13 = vector.shape_cast %12 : vector<1x1x1x32xf32> to vector<1x32xf32>
    %c4_23 = arith.constant 4 : index
    %c0_24 = arith.constant 0 : index
    %14 = vector.load %arg8[%c4_23, %c0_24] : memref<16x32xf32, #tpu.memory_space<vmem>>, vector<1x32xf32>
    tpu.vector_store %arg8[%c4_23, %c0_24], %13 {strides = array<i32>} : memref<16x32xf32, #tpu.memory_space<vmem>>, vector<1x32xf32>,
    %c0_25 = arith.constant 0 : index
    %c0_26 = arith.constant 0 : index
    %c0_27 = arith.constant 0 : index
    %c5 = arith.constant 5 : index
    %15 = vector.load %arg4[%c0_25, %c0_26, %c0_27, %c5] : memref<1x2x1x39xf32, #tpu.memory_space<vmem>>, vector<1x1x1x32xf32>
    %16 = vector.shape_cast %15 : vector<1x1x1x32xf32> to vector<1x32xf32>
    %c5_28 = arith.constant 5 : index
    %c0_29 = arith.constant 0 : index
    %17 = vector.load %arg8[%c5_28, %c0_29] : memref<16x32xf32, #tpu.memory_space<vmem>>, vector<1x32xf32>
    tpu.vector_store %arg8[%c5_28, %c0_29], %16 {strides = array<i32>} : memref<16x32xf32, #tpu.memory_space<vmem>>, vector<1x32xf32>,
    %c0_30 = arith.constant 0 : index
    %c0_31 = arith.constant 0 : index
    %c0_32 = arith.constant 0 : index
    %c6 = arith.constant 6 : index
    %18 = vector.load %arg4[%c0_30, %c0_31, %c0_32, %c6] : memref<1x2x1x39xf32, #tpu.memory_space<vmem>>, vector<1x1x1x32xf32>
    %19 = vector.shape_cast %18 : vector<1x1x1x32xf32> to vector<1x32xf32>
    %c6_33 = arith.constant 6 : index
    %c0_34 = arith.constant 0 : index
    %20 = vector.load %arg8[%c6_33, %c0_34] : memref<16x32xf32, #tpu.memory_space<vmem>>, vector<1x32xf32>
    tpu.vector_store %arg8[%c6_33, %c0_34], %19 {strides = array<i32>} : memref<16x32xf32, #tpu.memory_space<vmem>>, vector<1x32xf32>,
    %c0_35 = arith.constant 0 : index
    %c0_36 = arith.constant 0 : index
    %c0_37 = arith.constant 0 : index
    %c7 = arith.constant 7 : index
    %21 = vector.load %arg4[%c0_35, %c0_36, %c0_37, %c7] : memref<1x2x1x39xf32, #tpu.memory_space<vmem>>, vector<1x1x1x32xf32>
    %22 = vector.shape_cast %21 : vector<1x1x1x32xf32> to vector<1x32xf32>
    %c7_38 = arith.constant 7 : index
    %c0_39 = arith.constant 0 : index
    %23 = vector.load %arg8[%c7_38, %c0_39] : memref<16x32xf32, #tpu.memory_space<vmem>>, vector<1x32xf32>
    tpu.vector_store %arg8[%c7_38, %c0_39], %22 {strides = array<i32>} : memref<16x32xf32, #tpu.memory_space<vmem>>, vector<1x32xf32>,
    %c0_40 = arith.constant 0 : index
    %c1_41 = arith.constant 1 : index
    %c0_42 = arith.constant 0 : index
    %c0_43 = arith.constant 0 : index
    %24 = vector.load %arg4[%c0_40, %c1_41, %c0_42, %c0_43] : memref<1x2x1x39xf32, #tpu.memory_space<vmem>>, vector<1x1x1x32xf32>
    %25 = vector.shape_cast %24 : vector<1x1x1x32xf32> to vector<1x32xf32>
    %c8 = arith.constant 8 : index
    %c0_44 = arith.constant 0 : index
    %26 = vector.load %arg8[%c8, %c0_44] : memref<16x32xf32, #tpu.memory_space<vmem>>, vector<1x32xf32>
    tpu.vector_store %arg8[%c8, %c0_44], %25 {strides = array<i32>} : memref<16x32xf32, #tpu.memory_space<vmem>>, vector<1x32xf32>,
    %c0_45 = arith.constant 0 : index
    %c1_46 = arith.constant 1 : index
    %c0_47 = arith.constant 0 : index
    %c1_48 = arith.constant 1 : index
    %27 = vector.load %arg4[%c0_45, %c1_46, %c0_47, %c1_48] : memref<1x2x1x39xf32, #tpu.memory_space<vmem>>, vector<1x1x1x32xf32>
    %28 = vector.shape_cast %27 : vector<1x1x1x32xf32> to vector<1x32xf32>
    %c9 = arith.constant 9 : index
    %c0_49 = arith.constant 0 : index
    %29 = vector.load %arg8[%c9, %c0_49] : memref<16x32xf32, #tpu.memory_space<vmem>>, vector<1x32xf32>
    tpu.vector_store %arg8[%c9, %c0_49], %28 {strides = array<i32>} : memref<16x32xf32, #tpu.memory_space<vmem>>, vector<1x32xf32>,
    %c0_50 = arith.constant 0 : index
    %c1_51 = arith.constant 1 : index
    %c0_52 = arith.constant 0 : index
    %c2_53 = arith.constant 2 : index
    %30 = vector.load %arg4[%c0_50, %c1_51, %c0_52, %c2_53] : memref<1x2x1x39xf32, #tpu.memory_space<vmem>>, vector<1x1x1x32xf32>
    %31 = vector.shape_cast %30 : vector<1x1x1x32xf32> to vector<1x32xf32>
    %c10 = arith.constant 10 : index
    %c0_54 = arith.constant 0 : index
    %32 = vector.load %arg8[%c10, %c0_54] : memref<16x32xf32, #tpu.memory_space<vmem>>, vector<1x32xf32>
    tpu.vector_store %arg8[%c10, %c0_54], %31 {strides = array<i32>} : memref<16x32xf32, #tpu.memory_space<vmem>>, vector<1x32xf32>,
    %c0_55 = arith.constant 0 : index
    %c1_56 = arith.constant 1 : index
    %c0_57 = arith.constant 0 : index
    %c3_58 = arith.constant 3 : index
    %33 = vector.load %arg4[%c0_55, %c1_56, %c0_57, %c3_58] : memref<1x2x1x39xf32, #tpu.memory_space<vmem>>, vector<1x1x1x32xf32>
    %34 = vector.shape_cast %33 : vector<1x1x1x32xf32> to vector<1x32xf32>
    %c11 = arith.constant 11 : index
    %c0_59 = arith.constant 0 : index
    %35 = vector.load %arg8[%c11, %c0_59] : memref<16x32xf32, #tpu.memory_space<vmem>>, vector<1x32xf32>
    tpu.vector_store %arg8[%c11, %c0_59], %34 {strides = array<i32>} : memref<16x32xf32, #tpu.memory_space<vmem>>, vector<1x32xf32>,
    %c0_60 = arith.constant 0 : index
    %c1_61 = arith.constant 1 : index
    %c0_62 = arith.constant 0 : index
    %c4_63 = arith.constant 4 : index
    %36 = vector.load %arg4[%c0_60, %c1_61, %c0_62, %c4_63] : memref<1x2x1x39xf32, #tpu.memory_space<vmem>>, vector<1x1x1x32xf32>
    %37 = vector.shape_cast %36 : vector<1x1x1x32xf32> to vector<1x32xf32>
    %c12 = arith.constant 12 : index
    %c0_64 = arith.constant 0 : index
    %38 = vector.load %arg8[%c12, %c0_64] : memref<16x32xf32, #tpu.memory_space<vmem>>, vector<1x32xf32>
    tpu.vector_store %arg8[%c12, %c0_64], %37 {strides = array<i32>} : memref<16x32xf32, #tpu.memory_space<vmem>>, vector<1x32xf32>,
    %c0_65 = arith.constant 0 : index
    %c1_66 = arith.constant 1 : index
    %c0_67 = arith.constant 0 : index
    %c5_68 = arith.constant 5 : index
    %39 = vector.load %arg4[%c0_65, %c1_66, %c0_67, %c5_68] : memref<1x2x1x39xf32, #tpu.memory_space<vmem>>, vector<1x1x1x32xf32>
    %40 = vector.shape_cast %39 : vector<1x1x1x32xf32> to vector<1x32xf32>
    %c13 = arith.constant 13 : index
    %c0_69 = arith.constant 0 : index
    %41 = vector.load %arg8[%c13, %c0_69] : memref<16x32xf32, #tpu.memory_space<vmem>>, vector<1x32xf32>
    tpu.vector_store %arg8[%c13, %c0_69], %40 {strides = array<i32>} : memref<16x32xf32, #tpu.memory_space<vmem>>, vector<1x32xf32>,
    %c0_70 = arith.constant 0 : index
    %c1_71 = arith.constant 1 : index
    %c0_72 = arith.constant 0 : index
    %c6_73 = arith.constant 6 : index
    %42 = vector.load %arg4[%c0_70, %c1_71, %c0_72, %c6_73] : memref<1x2x1x39xf32, #tpu.memory_space<vmem>>, vector<1x1x1x32xf32>
    %43 = vector.shape_cast %42 : vector<1x1x1x32xf32> to vector<1x32xf32>
    %c14 = arith.constant 14 : index
    %c0_74 = arith.constant 0 : index
    %44 = vector.load %arg8[%c14, %c0_74] : memref<16x32xf32, #tpu.memory_space<vmem>>, vector<1x32xf32>
    tpu.vector_store %arg8[%c14, %c0_74], %43 {strides = array<i32>} : memref<16x32xf32, #tpu.memory_space<vmem>>, vector<1x32xf32>,
    %c0_75 = arith.constant 0 : index
    %c1_76 = arith.constant 1 : index
    %c0_77 = arith.constant 0 : index
    %c7_78 = arith.constant 7 : index
    %45 = vector.load %arg4[%c0_75, %c1_76, %c0_77, %c7_78] : memref<1x2x1x39xf32, #tpu.memory_space<vmem>>, vector<1x1x1x32xf32>
    %46 = vector.shape_cast %45 : vector<1x1x1x32xf32> to vector<1x32xf32>
    %c15 = arith.constant 15 : index
    %c0_79 = arith.constant 0 : index
    %47 = vector.load %arg8[%c15, %c0_79] : memref<16x32xf32, #tpu.memory_space<vmem>>, vector<1x32xf32>
    tpu.vector_store %arg8[%c15, %c0_79], %46 {strides = array<i32>} : memref<16x32xf32, #tpu.memory_space<vmem>>, vector<1x32xf32>,
    %c0_80 = arith.constant 0 : index
    %c0_81 = arith.constant 0 : index
    %48 = vector.load %arg5[%c0_80, %c0_81] : memref<8x16xf32, #tpu.memory_space<vmem>>, vector<8x16xf32>
    %c0_82 = arith.constant 0 : index
    %c0_83 = arith.constant 0 : index
    %49 = vector.load %arg8[%c0_82, %c0_83] : memref<16x32xf32, #tpu.memory_space<vmem>>, vector<16x32xf32>
    %cst = arith.constant dense<0.000000e+00> : vector<8x32xf32>
    %50 = tpu.matmul %48, %49, %cst {dimension_numbers = #tpu.dot_dimension_numbers<[1], [0], [0], [1], [0, 0, 1, 1], [], []>} : vector<8x16xf32>, vector<16x32xf32>, vector<8x32xf32> -> vector<8x32xf32>
    %c0_84 = arith.constant 0 : index
    %c0_85 = arith.constant 0 : index
    %51 = vector.load %arg6[%c0_84, %c0_85] : memref<8x1xf32, #tpu.memory_space<vmem>>, vector<8x1xf32>
    %52 = vector.broadcast %51 : vector<8x1xf32> to vector<8x32xf32>
    %53 = arith.addf %50, %52 : vector<8x32xf32>
    %cst_86 = arith.constant 0.000000e+00 : f32
    %54 = vector.broadcast %cst_86 : f32 to vector<8x32xf32>
    %55 = arith.cmpf oge, %53, %54 : vector<8x32xf32>
    %cst_87 = arith.constant 2.000000e-01 : f32
    %56 = vector.broadcast %cst_87 : f32 to vector<8x32xf32>
    %57 = arith.mulf %56, %53 : vector<8x32xf32>
    %58 = arith.select %55, %53, %57 : vector<8x32xi1>, vector<8x32xf32>
    %c0_88 = arith.constant 0 : index
    %c2_89 = arith.constant 2 : index
    %59 = vector.load %arg9[%c0_88, %c2_89] : memref<8x36xf32, #tpu.memory_space<vmem>>, vector<8x32xf32>
    tpu.vector_store %arg9[%c0_88, %c2_89], %58 {strides = array<i32>} : memref<8x36xf32, #tpu.memory_space<vmem>>, vector<8x32xf32>,
    %60 = vector.extract_strided_slice %58 {offsets = [0, 2], sizes = [8, 1], strides = [1, 1]} : vector<8x32xf32> to vector<8x1xf32>
    %c0_90 = arith.constant 0 : index
    %c0_91 = arith.constant 0 : index
    %61 = vector.load %arg9[%c0_90, %c0_91] : memref<8x36xf32, #tpu.memory_space<vmem>>, vector<8x1xf32>
    tpu.vector_store %arg9[%c0_90, %c0_91], %60 {strides = array<i32>} : memref<8x36xf32, #tpu.memory_space<vmem>>, vector<8x1xf32>,
    %62 = vector.extract_strided_slice %58 {offsets = [0, 30], sizes = [8, 1], strides = [1, 1]} : vector<8x32xf32> to vector<8x1xf32>
    %c0_92 = arith.constant 0 : index
    %c34 = arith.constant 34 : index
    %63 = vector.load %arg9[%c0_92, %c34] : memref<8x36xf32, #tpu.memory_space<vmem>>, vector<8x1xf32>
    tpu.vector_store %arg9[%c0_92, %c34], %62 {strides = array<i32>} : memref<8x36xf32, #tpu.memory_space<vmem>>, vector<8x1xf32>,
    %64 = vector.extract_strided_slice %58 {offsets = [0, 1], sizes = [8, 1], strides = [1, 1]} : vector<8x32xf32> to vector<8x1xf32>
    %c0_93 = arith.constant 0 : index
    %c1_94 = arith.constant 1 : index
    %65 = vector.load %arg9[%c0_93, %c1_94] : memref<8x36xf32, #tpu.memory_space<vmem>>, vector<8x1xf32>
    tpu.vector_store %arg9[%c0_93, %c1_94], %64 {strides = array<i32>} : memref<8x36xf32, #tpu.memory_space<vmem>>, vector<8x1xf32>,
    %66 = vector.extract_strided_slice %58 {offsets = [0, 29], sizes = [8, 1], strides = [1, 1]} : vector<8x32xf32> to vector<8x1xf32>
    %c0_95 = arith.constant 0 : index
    %c35 = arith.constant 35 : index
    %67 = vector.load %arg9[%c0_95, %c35] : memref<8x36xf32, #tpu.memory_space<vmem>>, vector<8x1xf32>
    tpu.vector_store %arg9[%c0_95, %c35], %66 {strides = array<i32>} : memref<8x36xf32, #tpu.memory_space<vmem>>, vector<8x1xf32>,
    %68 = arith.index_cast %arg0 : i32 to index
    %69 = memref.load %arg3[%68] : memref<2xi32, #tpu.memory_space<smem>>
    %c0_96 = arith.constant 0 : index
    %c2_97 = arith.constant 2 : index
    %70 = vector.load %arg9[%c0_96, %c2_97] : memref<8x36xf32, #tpu.memory_space<vmem>>, vector<8x32xf32>
    %c-2_i32 = arith.constant -2 : i32
    %71 = arith.cmpi eq, %69, %c-2_i32 : i32
    %c0_98 = arith.constant 0 : index
    %c4_99 = arith.constant 4 : index
    %72 = vector.load %arg9[%c0_98, %c4_99] : memref<8x36xf32, #tpu.memory_space<vmem>>, vector<8x32xf32>
    %73 = arith.select %71, %72, %70 : vector<8x32xf32>
    %c-1_i32 = arith.constant -1 : i32
    %74 = arith.cmpi eq, %69, %c-1_i32 : i32
    %c0_100 = arith.constant 0 : index
    %c3_101 = arith.constant 3 : index
    %75 = vector.load %arg9[%c0_100, %c3_101] : memref<8x36xf32, #tpu.memory_space<vmem>>, vector<8x32xf32>
    %76 = arith.select %74, %75, %73 : vector<8x32xf32>
    %c1_i32 = arith.constant 1 : i32
    %77 = arith.cmpi eq, %69, %c1_i32 : i32
    %c0_102 = arith.constant 0 : index
    %c1_103 = arith.constant 1 : index
    %78 = vector.load %arg9[%c0_102, %c1_103] : memref<8x36xf32, #tpu.memory_space<vmem>>, vector<8x32xf32>
    %79 = arith.select %77, %78, %76 : vector<8x32xf32>
    %c2_i32 = arith.constant 2 : i32
    %80 = arith.cmpi eq, %69, %c2_i32 : i32
    %c0_104 = arith.constant 0 : index
    %c0_105 = arith.constant 0 : index
    %81 = vector.load %arg9[%c0_104, %c0_105] : memref<8x36xf32, #tpu.memory_space<vmem>>, vector<8x32xf32>
    %82 = arith.select %80, %81, %79 : vector<8x32xf32>
    %c0_106 = arith.constant 0 : index
    %c0_107 = arith.constant 0 : index
    %c0_108 = arith.constant 0 : index
    %83 = vector.load %arg7[%c0_106, %c0_107, %c0_108] : memref<1x8x32xf32, #tpu.memory_space<vmem>>, vector<1x8x32xf32>
    %84 = vector.shape_cast %83 : vector<1x8x32xf32> to vector<8x32xf32>
    %85 = vector.shape_cast %82 : vector<8x32xf32> to vector<1x8x32xf32>
    tpu.vector_store %arg7[%c0_106, %c0_107, %c0_108], %85 {strides = array<i32>} : memref<1x8x32xf32, #tpu.memory_space<vmem>>, vector<1x8x32xf32>,
    return
  }
  func.func @transform_0(%arg0: i32, %arg1: i32, %arg2: i32, %arg3: memref<2xi32, #tpu.memory_space<smem>>) -> (i32, i32, i32, i32) {
    %c0_i32 = arith.constant 0 : i32
    %c0_i32_0 = arith.constant 0 : i32
    %c0_i32_1 = arith.constant 0 : i32
    %c0_i32_2 = arith.constant 0 : i32
    return %arg0, %c0_i32, %c0_i32_0, %c0_i32_1 : i32, i32, i32, i32
  }
  func.func @transform_1(%arg0: i32, %arg1: i32, %arg2: i32, %arg3: memref<2xi32, #tpu.memory_space<smem>>) -> (i32, i32) {
    %c0_i32 = arith.constant 0 : i32
    %c0_i32_0 = arith.constant 0 : i32
    return %arg1, %c0_i32 : i32, i32
  }
  func.func @transform_2(%arg0: i32, %arg1: i32, %arg2: i32, %arg3: memref<2xi32, #tpu.memory_space<smem>>) -> (i32, i32) {
    %c0_i32 = arith.constant 0 : i32
    %c0_i32_0 = arith.constant 0 : i32
    return %arg1, %c0_i32 : i32, i32
  }
  func.func @transform_3(%arg0: i32, %arg1: i32, %arg2: i32, %arg3: memref<2xi32, #tpu.memory_space<smem>>) -> (i32, i32, i32) {
    %c0_i32 = arith.constant 0 : i32
    return %arg0, %arg1, %arg2 : i32, i32, i32
  }
}

module attributes {stable_mosaic.version = 11 : i64} {
  func.func @_conv_kernel(%arg0: i32, %arg1: i32, %arg2: i32, %arg3: memref<2xi32, #tpu.memory_space<smem>>, %arg4: memref<1x2x8x23xf32, #tpu.memory_space<vmem>>, %arg5: memref<16x128xf32, #tpu.memory_space<vmem>>, %arg6: memref<16x1xf32, #tpu.memory_space<vmem>>, %arg7: memref<1x16x16xf32, #tpu.memory_space<vmem>>, %arg8: memref<128x16xf32, #tpu.memory_space<vmem>>, %arg9: memref<16x20xf32, #tpu.memory_space<vmem>>) attributes {dimension_semantics = [#tpu.dimension_semantics<parallel>, #tpu.dimension_semantics<parallel>, #tpu.dimension_semantics<parallel>], iteration_bounds = array<i64: 2, 1, 1>, scalar_prefetch = 1 : i64, scratch_operands = 2 : i64, tpu.core_type = #tpu.core_type<tc>, window_params = [{transform_indices = @transform_0, window_bounds = array<i64: 1, 2, 8, 23>}, {transform_indices = @transform_1, window_bounds = array<i64: 16, 128>}, {transform_indices = @transform_2, window_bounds = array<i64: 16, 1>}, {transform_indices = @transform_3, window_bounds = array<i64: 1, 16, 16>}]} {
    %c0 = arith.constant 0 : index
    %c0_0 = arith.constant 0 : index
    %c0_1 = arith.constant 0 : index
    %c0_2 = arith.constant 0 : index
    %0 = vector.load %arg4[%c0, %c0_0, %c0_1, %c0_2] : memref<1x2x8x23xf32, #tpu.memory_space<vmem>>, vector<1x1x8x16xf32>
    %1 = vector.shape_cast %0 : vector<1x1x8x16xf32> to vector<8x16xf32>
    %c0_3 = arith.constant 0 : index
    %c0_4 = arith.constant 0 : index
    %2 = vector.load %arg8[%c0_3, %c0_4] : memref<128x16xf32, #tpu.memory_space<vmem>>, vector<8x16xf32>
    tpu.vector_store %arg8[%c0_3, %c0_4], %1 {strides = array<i32>} : memref<128x16xf32, #tpu.memory_space<vmem>>, vector<8x16xf32>,
    %c0_5 = arith.constant 0 : index
    %c0_6 = arith.constant 0 : index
    %c0_7 = arith.constant 0 : index
    %c1 = arith.constant 1 : index
    %3 = vector.load %arg4[%c0_5, %c0_6, %c0_7, %c1] : memref<1x2x8x23xf32, #tpu.memory_space<vmem>>, vector<1x1x8x16xf32>
    %4 = vector.shape_cast %3 : vector<1x1x8x16xf32> to vector<8x16xf32>
    %c8 = arith.constant 8 : index
    %c0_8 = arith.constant 0 : index
    %5 = vector.load %arg8[%c8, %c0_8] : memref<128x16xf32, #tpu.memory_space<vmem>>, vector<8x16xf32>
    tpu.vector_store %arg8[%c8, %c0_8], %4 {strides = array<i32>} : memref<128x16xf32, #tpu.memory_space<vmem>>, vector<8x16xf32>,
    %c0_9 = arith.constant 0 : index
    %c0_10 = arith.constant 0 : index
    %c0_11 = arith.constant 0 : index
    %c2 = arith.constant 2 : index
    %6 = vector.load %arg4[%c0_9, %c0_10, %c0_11, %c2] : memref<1x2x8x23xf32, #tpu.memory_space<vmem>>, vector<1x1x8x16xf32>
    %7 = vector.shape_cast %6 : vector<1x1x8x16xf32> to vector<8x16xf32>
    %c16 = arith.constant 16 : index
    %c0_12 = arith.constant 0 : index
    %8 = vector.load %arg8[%c16, %c0_12] : memref<128x16xf32, #tpu.memory_space<vmem>>, vector<8x16xf32>
    tpu.vector_store %arg8[%c16, %c0_12], %7 {strides = array<i32>} : memref<128x16xf32, #tpu.memory_space<vmem>>, vector<8x16xf32>,
    %c0_13 = arith.constant 0 : index
    %c0_14 = arith.constant 0 : index
    %c0_15 = arith.constant 0 : index
    %c3 = arith.constant 3 : index
    %9 = vector.load %arg4[%c0_13, %c0_14, %c0_15, %c3] : memref<1x2x8x23xf32, #tpu.memory_space<vmem>>, vector<1x1x8x16xf32>
    %10 = vector.shape_cast %9 : vector<1x1x8x16xf32> to vector<8x16xf32>
    %c24 = arith.constant 24 : index
    %c0_16 = arith.constant 0 : index
    %11 = vector.load %arg8[%c24, %c0_16] : memref<128x16xf32, #tpu.memory_space<vmem>>, vector<8x16xf32>
    tpu.vector_store %arg8[%c24, %c0_16], %10 {strides = array<i32>} : memref<128x16xf32, #tpu.memory_space<vmem>>, vector<8x16xf32>,
    %c0_17 = arith.constant 0 : index
    %c0_18 = arith.constant 0 : index
    %c0_19 = arith.constant 0 : index
    %c4 = arith.constant 4 : index
    %12 = vector.load %arg4[%c0_17, %c0_18, %c0_19, %c4] : memref<1x2x8x23xf32, #tpu.memory_space<vmem>>, vector<1x1x8x16xf32>
    %13 = vector.shape_cast %12 : vector<1x1x8x16xf32> to vector<8x16xf32>
    %c32 = arith.constant 32 : index
    %c0_20 = arith.constant 0 : index
    %14 = vector.load %arg8[%c32, %c0_20] : memref<128x16xf32, #tpu.memory_space<vmem>>, vector<8x16xf32>
    tpu.vector_store %arg8[%c32, %c0_20], %13 {strides = array<i32>} : memref<128x16xf32, #tpu.memory_space<vmem>>, vector<8x16xf32>,
    %c0_21 = arith.constant 0 : index
    %c0_22 = arith.constant 0 : index
    %c0_23 = arith.constant 0 : index
    %c5 = arith.constant 5 : index
    %15 = vector.load %arg4[%c0_21, %c0_22, %c0_23, %c5] : memref<1x2x8x23xf32, #tpu.memory_space<vmem>>, vector<1x1x8x16xf32>
    %16 = vector.shape_cast %15 : vector<1x1x8x16xf32> to vector<8x16xf32>
    %c40 = arith.constant 40 : index
    %c0_24 = arith.constant 0 : index
    %17 = vector.load %arg8[%c40, %c0_24] : memref<128x16xf32, #tpu.memory_space<vmem>>, vector<8x16xf32>
    tpu.vector_store %arg8[%c40, %c0_24], %16 {strides = array<i32>} : memref<128x16xf32, #tpu.memory_space<vmem>>, vector<8x16xf32>,
    %c0_25 = arith.constant 0 : index
    %c0_26 = arith.constant 0 : index
    %c0_27 = arith.constant 0 : index
    %c6 = arith.constant 6 : index
    %18 = vector.load %arg4[%c0_25, %c0_26, %c0_27, %c6] : memref<1x2x8x23xf32, #tpu.memory_space<vmem>>, vector<1x1x8x16xf32>
    %19 = vector.shape_cast %18 : vector<1x1x8x16xf32> to vector<8x16xf32>
    %c48 = arith.constant 48 : index
    %c0_28 = arith.constant 0 : index
    %20 = vector.load %arg8[%c48, %c0_28] : memref<128x16xf32, #tpu.memory_space<vmem>>, vector<8x16xf32>
    tpu.vector_store %arg8[%c48, %c0_28], %19 {strides = array<i32>} : memref<128x16xf32, #tpu.memory_space<vmem>>, vector<8x16xf32>,
    %c0_29 = arith.constant 0 : index
    %c0_30 = arith.constant 0 : index
    %c0_31 = arith.constant 0 : index
    %c7 = arith.constant 7 : index
    %21 = vector.load %arg4[%c0_29, %c0_30, %c0_31, %c7] : memref<1x2x8x23xf32, #tpu.memory_space<vmem>>, vector<1x1x8x16xf32>
    %22 = vector.shape_cast %21 : vector<1x1x8x16xf32> to vector<8x16xf32>
    %c56 = arith.constant 56 : index
    %c0_32 = arith.constant 0 : index
    %23 = vector.load %arg8[%c56, %c0_32] : memref<128x16xf32, #tpu.memory_space<vmem>>, vector<8x16xf32>
    tpu.vector_store %arg8[%c56, %c0_32], %22 {strides = array<i32>} : memref<128x16xf32, #tpu.memory_space<vmem>>, vector<8x16xf32>,
    %c0_33 = arith.constant 0 : index
    %c1_34 = arith.constant 1 : index
    %c0_35 = arith.constant 0 : index
    %c0_36 = arith.constant 0 : index
    %24 = vector.load %arg4[%c0_33, %c1_34, %c0_35, %c0_36] : memref<1x2x8x23xf32, #tpu.memory_space<vmem>>, vector<1x1x8x16xf32>
    %25 = vector.shape_cast %24 : vector<1x1x8x16xf32> to vector<8x16xf32>
    %c64 = arith.constant 64 : index
    %c0_37 = arith.constant 0 : index
    %26 = vector.load %arg8[%c64, %c0_37] : memref<128x16xf32, #tpu.memory_space<vmem>>, vector<8x16xf32>
    tpu.vector_store %arg8[%c64, %c0_37], %25 {strides = array<i32>} : memref<128x16xf32, #tpu.memory_space<vmem>>, vector<8x16xf32>,
    %c0_38 = arith.constant 0 : index
    %c1_39 = arith.constant 1 : index
    %c0_40 = arith.constant 0 : index
    %c1_41 = arith.constant 1 : index
    %27 = vector.load %arg4[%c0_38, %c1_39, %c0_40, %c1_41] : memref<1x2x8x23xf32, #tpu.memory_space<vmem>>, vector<1x1x8x16xf32>
    %28 = vector.shape_cast %27 : vector<1x1x8x16xf32> to vector<8x16xf32>
    %c72 = arith.constant 72 : index
    %c0_42 = arith.constant 0 : index
    %29 = vector.load %arg8[%c72, %c0_42] : memref<128x16xf32, #tpu.memory_space<vmem>>, vector<8x16xf32>
    tpu.vector_store %arg8[%c72, %c0_42], %28 {strides = array<i32>} : memref<128x16xf32, #tpu.memory_space<vmem>>, vector<8x16xf32>,
    %c0_43 = arith.constant 0 : index
    %c1_44 = arith.constant 1 : index
    %c0_45 = arith.constant 0 : index
    %c2_46 = arith.constant 2 : index
    %30 = vector.load %arg4[%c0_43, %c1_44, %c0_45, %c2_46] : memref<1x2x8x23xf32, #tpu.memory_space<vmem>>, vector<1x1x8x16xf32>
    %31 = vector.shape_cast %30 : vector<1x1x8x16xf32> to vector<8x16xf32>
    %c80 = arith.constant 80 : index
    %c0_47 = arith.constant 0 : index
    %32 = vector.load %arg8[%c80, %c0_47] : memref<128x16xf32, #tpu.memory_space<vmem>>, vector<8x16xf32>
    tpu.vector_store %arg8[%c80, %c0_47], %31 {strides = array<i32>} : memref<128x16xf32, #tpu.memory_space<vmem>>, vector<8x16xf32>,
    %c0_48 = arith.constant 0 : index
    %c1_49 = arith.constant 1 : index
    %c0_50 = arith.constant 0 : index
    %c3_51 = arith.constant 3 : index
    %33 = vector.load %arg4[%c0_48, %c1_49, %c0_50, %c3_51] : memref<1x2x8x23xf32, #tpu.memory_space<vmem>>, vector<1x1x8x16xf32>
    %34 = vector.shape_cast %33 : vector<1x1x8x16xf32> to vector<8x16xf32>
    %c88 = arith.constant 88 : index
    %c0_52 = arith.constant 0 : index
    %35 = vector.load %arg8[%c88, %c0_52] : memref<128x16xf32, #tpu.memory_space<vmem>>, vector<8x16xf32>
    tpu.vector_store %arg8[%c88, %c0_52], %34 {strides = array<i32>} : memref<128x16xf32, #tpu.memory_space<vmem>>, vector<8x16xf32>,
    %c0_53 = arith.constant 0 : index
    %c1_54 = arith.constant 1 : index
    %c0_55 = arith.constant 0 : index
    %c4_56 = arith.constant 4 : index
    %36 = vector.load %arg4[%c0_53, %c1_54, %c0_55, %c4_56] : memref<1x2x8x23xf32, #tpu.memory_space<vmem>>, vector<1x1x8x16xf32>
    %37 = vector.shape_cast %36 : vector<1x1x8x16xf32> to vector<8x16xf32>
    %c96 = arith.constant 96 : index
    %c0_57 = arith.constant 0 : index
    %38 = vector.load %arg8[%c96, %c0_57] : memref<128x16xf32, #tpu.memory_space<vmem>>, vector<8x16xf32>
    tpu.vector_store %arg8[%c96, %c0_57], %37 {strides = array<i32>} : memref<128x16xf32, #tpu.memory_space<vmem>>, vector<8x16xf32>,
    %c0_58 = arith.constant 0 : index
    %c1_59 = arith.constant 1 : index
    %c0_60 = arith.constant 0 : index
    %c5_61 = arith.constant 5 : index
    %39 = vector.load %arg4[%c0_58, %c1_59, %c0_60, %c5_61] : memref<1x2x8x23xf32, #tpu.memory_space<vmem>>, vector<1x1x8x16xf32>
    %40 = vector.shape_cast %39 : vector<1x1x8x16xf32> to vector<8x16xf32>
    %c104 = arith.constant 104 : index
    %c0_62 = arith.constant 0 : index
    %41 = vector.load %arg8[%c104, %c0_62] : memref<128x16xf32, #tpu.memory_space<vmem>>, vector<8x16xf32>
    tpu.vector_store %arg8[%c104, %c0_62], %40 {strides = array<i32>} : memref<128x16xf32, #tpu.memory_space<vmem>>, vector<8x16xf32>,
    %c0_63 = arith.constant 0 : index
    %c1_64 = arith.constant 1 : index
    %c0_65 = arith.constant 0 : index
    %c6_66 = arith.constant 6 : index
    %42 = vector.load %arg4[%c0_63, %c1_64, %c0_65, %c6_66] : memref<1x2x8x23xf32, #tpu.memory_space<vmem>>, vector<1x1x8x16xf32>
    %43 = vector.shape_cast %42 : vector<1x1x8x16xf32> to vector<8x16xf32>
    %c112 = arith.constant 112 : index
    %c0_67 = arith.constant 0 : index
    %44 = vector.load %arg8[%c112, %c0_67] : memref<128x16xf32, #tpu.memory_space<vmem>>, vector<8x16xf32>
    tpu.vector_store %arg8[%c112, %c0_67], %43 {strides = array<i32>} : memref<128x16xf32, #tpu.memory_space<vmem>>, vector<8x16xf32>,
    %c0_68 = arith.constant 0 : index
    %c1_69 = arith.constant 1 : index
    %c0_70 = arith.constant 0 : index
    %c7_71 = arith.constant 7 : index
    %45 = vector.load %arg4[%c0_68, %c1_69, %c0_70, %c7_71] : memref<1x2x8x23xf32, #tpu.memory_space<vmem>>, vector<1x1x8x16xf32>
    %46 = vector.shape_cast %45 : vector<1x1x8x16xf32> to vector<8x16xf32>
    %c120 = arith.constant 120 : index
    %c0_72 = arith.constant 0 : index
    %47 = vector.load %arg8[%c120, %c0_72] : memref<128x16xf32, #tpu.memory_space<vmem>>, vector<8x16xf32>
    tpu.vector_store %arg8[%c120, %c0_72], %46 {strides = array<i32>} : memref<128x16xf32, #tpu.memory_space<vmem>>, vector<8x16xf32>,
    %c0_73 = arith.constant 0 : index
    %c0_74 = arith.constant 0 : index
    %48 = vector.load %arg5[%c0_73, %c0_74] : memref<16x128xf32, #tpu.memory_space<vmem>>, vector<16x128xf32>
    %c0_75 = arith.constant 0 : index
    %c0_76 = arith.constant 0 : index
    %49 = vector.load %arg8[%c0_75, %c0_76] : memref<128x16xf32, #tpu.memory_space<vmem>>, vector<128x16xf32>
    %cst = arith.constant dense<0.000000e+00> : vector<16x16xf32>
    %50 = tpu.matmul %48, %49, %cst {dimension_numbers = #tpu.dot_dimension_numbers<[1], [0], [0], [1], [0, 0, 1, 1], [], []>} : vector<16x128xf32>, vector<128x16xf32>, vector<16x16xf32> -> vector<16x16xf32>
    %c0_77 = arith.constant 0 : index
    %c0_78 = arith.constant 0 : index
    %51 = vector.load %arg6[%c0_77, %c0_78] : memref<16x1xf32, #tpu.memory_space<vmem>>, vector<16x1xf32>
    %52 = vector.broadcast %51 : vector<16x1xf32> to vector<16x16xf32>
    %53 = arith.addf %50, %52 : vector<16x16xf32>
    %cst_79 = arith.constant 0.000000e+00 : f32
    %54 = vector.broadcast %cst_79 : f32 to vector<16x16xf32>
    %55 = arith.cmpf oge, %53, %54 : vector<16x16xf32>
    %cst_80 = arith.constant 2.000000e-01 : f32
    %56 = vector.broadcast %cst_80 : f32 to vector<16x16xf32>
    %57 = arith.mulf %56, %53 : vector<16x16xf32>
    %58 = arith.select %55, %53, %57 : vector<16x16xi1>, vector<16x16xf32>
    %c0_81 = arith.constant 0 : index
    %c2_82 = arith.constant 2 : index
    %59 = vector.load %arg9[%c0_81, %c2_82] : memref<16x20xf32, #tpu.memory_space<vmem>>, vector<16x16xf32>
    tpu.vector_store %arg9[%c0_81, %c2_82], %58 {strides = array<i32>} : memref<16x20xf32, #tpu.memory_space<vmem>>, vector<16x16xf32>,
    %60 = vector.extract_strided_slice %58 {offsets = [0, 2], sizes = [16, 1], strides = [1, 1]} : vector<16x16xf32> to vector<16x1xf32>
    %c0_83 = arith.constant 0 : index
    %c0_84 = arith.constant 0 : index
    %61 = vector.load %arg9[%c0_83, %c0_84] : memref<16x20xf32, #tpu.memory_space<vmem>>, vector<16x1xf32>
    tpu.vector_store %arg9[%c0_83, %c0_84], %60 {strides = array<i32>} : memref<16x20xf32, #tpu.memory_space<vmem>>, vector<16x1xf32>,
    %62 = vector.extract_strided_slice %58 {offsets = [0, 14], sizes = [16, 1], strides = [1, 1]} : vector<16x16xf32> to vector<16x1xf32>
    %c0_85 = arith.constant 0 : index
    %c18 = arith.constant 18 : index
    %63 = vector.load %arg9[%c0_85, %c18] : memref<16x20xf32, #tpu.memory_space<vmem>>, vector<16x1xf32>
    tpu.vector_store %arg9[%c0_85, %c18], %62 {strides = array<i32>} : memref<16x20xf32, #tpu.memory_space<vmem>>, vector<16x1xf32>,
    %64 = vector.extract_strided_slice %58 {offsets = [0, 1], sizes = [16, 1], strides = [1, 1]} : vector<16x16xf32> to vector<16x1xf32>
    %c0_86 = arith.constant 0 : index
    %c1_87 = arith.constant 1 : index
    %65 = vector.load %arg9[%c0_86, %c1_87] : memref<16x20xf32, #tpu.memory_space<vmem>>, vector<16x1xf32>
    tpu.vector_store %arg9[%c0_86, %c1_87], %64 {strides = array<i32>} : memref<16x20xf32, #tpu.memory_space<vmem>>, vector<16x1xf32>,
    %66 = vector.extract_strided_slice %58 {offsets = [0, 13], sizes = [16, 1], strides = [1, 1]} : vector<16x16xf32> to vector<16x1xf32>
    %c0_88 = arith.constant 0 : index
    %c19 = arith.constant 19 : index
    %67 = vector.load %arg9[%c0_88, %c19] : memref<16x20xf32, #tpu.memory_space<vmem>>, vector<16x1xf32>
    tpu.vector_store %arg9[%c0_88, %c19], %66 {strides = array<i32>} : memref<16x20xf32, #tpu.memory_space<vmem>>, vector<16x1xf32>,
    %68 = arith.index_cast %arg0 : i32 to index
    %69 = memref.load %arg3[%68] : memref<2xi32, #tpu.memory_space<smem>>
    %c0_89 = arith.constant 0 : index
    %c2_90 = arith.constant 2 : index
    %70 = vector.load %arg9[%c0_89, %c2_90] : memref<16x20xf32, #tpu.memory_space<vmem>>, vector<16x16xf32>
    %c-2_i32 = arith.constant -2 : i32
    %71 = arith.cmpi eq, %69, %c-2_i32 : i32
    %c0_91 = arith.constant 0 : index
    %c4_92 = arith.constant 4 : index
    %72 = vector.load %arg9[%c0_91, %c4_92] : memref<16x20xf32, #tpu.memory_space<vmem>>, vector<16x16xf32>
    %73 = arith.select %71, %72, %70 : vector<16x16xf32>
    %c-1_i32 = arith.constant -1 : i32
    %74 = arith.cmpi eq, %69, %c-1_i32 : i32
    %c0_93 = arith.constant 0 : index
    %c3_94 = arith.constant 3 : index
    %75 = vector.load %arg9[%c0_93, %c3_94] : memref<16x20xf32, #tpu.memory_space<vmem>>, vector<16x16xf32>
    %76 = arith.select %74, %75, %73 : vector<16x16xf32>
    %c1_i32 = arith.constant 1 : i32
    %77 = arith.cmpi eq, %69, %c1_i32 : i32
    %c0_95 = arith.constant 0 : index
    %c1_96 = arith.constant 1 : index
    %78 = vector.load %arg9[%c0_95, %c1_96] : memref<16x20xf32, #tpu.memory_space<vmem>>, vector<16x16xf32>
    %79 = arith.select %77, %78, %76 : vector<16x16xf32>
    %c2_i32 = arith.constant 2 : i32
    %80 = arith.cmpi eq, %69, %c2_i32 : i32
    %c0_97 = arith.constant 0 : index
    %c0_98 = arith.constant 0 : index
    %81 = vector.load %arg9[%c0_97, %c0_98] : memref<16x20xf32, #tpu.memory_space<vmem>>, vector<16x16xf32>
    %82 = arith.select %80, %81, %79 : vector<16x16xf32>
    %c0_99 = arith.constant 0 : index
    %c0_100 = arith.constant 0 : index
    %c0_101 = arith.constant 0 : index
    %83 = vector.load %arg7[%c0_99, %c0_100, %c0_101] : memref<1x16x16xf32, #tpu.memory_space<vmem>>, vector<1x16x16xf32>
    %84 = vector.shape_cast %83 : vector<1x16x16xf32> to vector<16x16xf32>
    %85 = vector.shape_cast %82 : vector<16x16xf32> to vector<1x16x16xf32>
    tpu.vector_store %arg7[%c0_99, %c0_100, %c0_101], %85 {strides = array<i32>} : memref<1x16x16xf32, #tpu.memory_space<vmem>>, vector<1x16x16xf32>,
    return
  }
  func.func @transform_0(%arg0: i32, %arg1: i32, %arg2: i32, %arg3: memref<2xi32, #tpu.memory_space<smem>>) -> (i32, i32, i32, i32) {
    %c0_i32 = arith.constant 0 : i32
    %c0_i32_0 = arith.constant 0 : i32
    %c0_i32_1 = arith.constant 0 : i32
    %c0_i32_2 = arith.constant 0 : i32
    return %arg0, %c0_i32, %c0_i32_0, %c0_i32_1 : i32, i32, i32, i32
  }
  func.func @transform_1(%arg0: i32, %arg1: i32, %arg2: i32, %arg3: memref<2xi32, #tpu.memory_space<smem>>) -> (i32, i32) {
    %c0_i32 = arith.constant 0 : i32
    %c0_i32_0 = arith.constant 0 : i32
    return %arg1, %c0_i32 : i32, i32
  }
  func.func @transform_2(%arg0: i32, %arg1: i32, %arg2: i32, %arg3: memref<2xi32, #tpu.memory_space<smem>>) -> (i32, i32) {
    %c0_i32 = arith.constant 0 : i32
    %c0_i32_0 = arith.constant 0 : i32
    return %arg1, %c0_i32 : i32, i32
  }
  func.func @transform_3(%arg0: i32, %arg1: i32, %arg2: i32, %arg3: memref<2xi32, #tpu.memory_space<smem>>) -> (i32, i32, i32) {
    %c0_i32 = arith.constant 0 : i32
    return %arg0, %arg1, %arg2 : i32, i32, i32
  }
}

module attributes {stable_mosaic.version = 11 : i64} {
  func.func @_conv_kernel(%arg0: i32, %arg1: i32, %arg2: i32, %arg3: memref<2xi32, #tpu.memory_space<smem>>, %arg4: memref<1x2x16x15xf32, #tpu.memory_space<vmem>>, %arg5: memref<32x256xf32, #tpu.memory_space<vmem>>, %arg6: memref<32x1xf32, #tpu.memory_space<vmem>>, %arg7: memref<1x32x8xf32, #tpu.memory_space<vmem>>, %arg8: memref<256x8xf32, #tpu.memory_space<vmem>>, %arg9: memref<32x12xf32, #tpu.memory_space<vmem>>) attributes {dimension_semantics = [#tpu.dimension_semantics<parallel>, #tpu.dimension_semantics<parallel>, #tpu.dimension_semantics<parallel>], iteration_bounds = array<i64: 2, 1, 1>, scalar_prefetch = 1 : i64, scratch_operands = 2 : i64, tpu.core_type = #tpu.core_type<tc>, window_params = [{transform_indices = @transform_0, window_bounds = array<i64: 1, 2, 16, 15>}, {transform_indices = @transform_1, window_bounds = array<i64: 32, 256>}, {transform_indices = @transform_2, window_bounds = array<i64: 32, 1>}, {transform_indices = @transform_3, window_bounds = array<i64: 1, 32, 8>}]} {
    %c0 = arith.constant 0 : index
    %c0_0 = arith.constant 0 : index
    %c0_1 = arith.constant 0 : index
    %c0_2 = arith.constant 0 : index
    %0 = vector.load %arg4[%c0, %c0_0, %c0_1, %c0_2] : memref<1x2x16x15xf32, #tpu.memory_space<vmem>>, vector<1x1x16x8xf32>
    %1 = vector.shape_cast %0 : vector<1x1x16x8xf32> to vector<16x8xf32>
    %c0_3 = arith.constant 0 : index
    %c0_4 = arith.constant 0 : index
    %2 = vector.load %arg8[%c0_3, %c0_4] : memref<256x8xf32, #tpu.memory_space<vmem>>, vector<16x8xf32>
    tpu.vector_store %arg8[%c0_3, %c0_4], %1 {strides = array<i32>} : memref<256x8xf32, #tpu.memory_space<vmem>>, vector<16x8xf32>,
    %c0_5 = arith.constant 0 : index
    %c0_6 = arith.constant 0 : index
    %c0_7 = arith.constant 0 : index
    %c1 = arith.constant 1 : index
    %3 = vector.load %arg4[%c0_5, %c0_6, %c0_7, %c1] : memref<1x2x16x15xf32, #tpu.memory_space<vmem>>, vector<1x1x16x8xf32>
    %4 = vector.shape_cast %3 : vector<1x1x16x8xf32> to vector<16x8xf32>
    %c16 = arith.constant 16 : index
    %c0_8 = arith.constant 0 : index
    %5 = vector.load %arg8[%c16, %c0_8] : memref<256x8xf32, #tpu.memory_space<vmem>>, vector<16x8xf32>
    tpu.vector_store %arg8[%c16, %c0_8], %4 {strides = array<i32>} : memref<256x8xf32, #tpu.memory_space<vmem>>, vector<16x8xf32>,
    %c0_9 = arith.constant 0 : index
    %c0_10 = arith.constant 0 : index
    %c0_11 = arith.constant 0 : index
    %c2 = arith.constant 2 : index
    %6 = vector.load %arg4[%c0_9, %c0_10, %c0_11, %c2] : memref<1x2x16x15xf32, #tpu.memory_space<vmem>>, vector<1x1x16x8xf32>
    %7 = vector.shape_cast %6 : vector<1x1x16x8xf32> to vector<16x8xf32>
    %c32 = arith.constant 32 : index
    %c0_12 = arith.constant 0 : index
    %8 = vector.load %arg8[%c32, %c0_12] : memref<256x8xf32, #tpu.memory_space<vmem>>, vector<16x8xf32>
    tpu.vector_store %arg8[%c32, %c0_12], %7 {strides = array<i32>} : memref<256x8xf32, #tpu.memory_space<vmem>>, vector<16x8xf32>,
    %c0_13 = arith.constant 0 : index
    %c0_14 = arith.constant 0 : index
    %c0_15 = arith.constant 0 : index
    %c3 = arith.constant 3 : index
    %9 = vector.load %arg4[%c0_13, %c0_14, %c0_15, %c3] : memref<1x2x16x15xf32, #tpu.memory_space<vmem>>, vector<1x1x16x8xf32>
    %10 = vector.shape_cast %9 : vector<1x1x16x8xf32> to vector<16x8xf32>
    %c48 = arith.constant 48 : index
    %c0_16 = arith.constant 0 : index
    %11 = vector.load %arg8[%c48, %c0_16] : memref<256x8xf32, #tpu.memory_space<vmem>>, vector<16x8xf32>
    tpu.vector_store %arg8[%c48, %c0_16], %10 {strides = array<i32>} : memref<256x8xf32, #tpu.memory_space<vmem>>, vector<16x8xf32>,
    %c0_17 = arith.constant 0 : index
    %c0_18 = arith.constant 0 : index
    %c0_19 = arith.constant 0 : index
    %c4 = arith.constant 4 : index
    %12 = vector.load %arg4[%c0_17, %c0_18, %c0_19, %c4] : memref<1x2x16x15xf32, #tpu.memory_space<vmem>>, vector<1x1x16x8xf32>
    %13 = vector.shape_cast %12 : vector<1x1x16x8xf32> to vector<16x8xf32>
    %c64 = arith.constant 64 : index
    %c0_20 = arith.constant 0 : index
    %14 = vector.load %arg8[%c64, %c0_20] : memref<256x8xf32, #tpu.memory_space<vmem>>, vector<16x8xf32>
    tpu.vector_store %arg8[%c64, %c0_20], %13 {strides = array<i32>} : memref<256x8xf32, #tpu.memory_space<vmem>>, vector<16x8xf32>,
    %c0_21 = arith.constant 0 : index
    %c0_22 = arith.constant 0 : index
    %c0_23 = arith.constant 0 : index
    %c5 = arith.constant 5 : index
    %15 = vector.load %arg4[%c0_21, %c0_22, %c0_23, %c5] : memref<1x2x16x15xf32, #tpu.memory_space<vmem>>, vector<1x1x16x8xf32>
    %16 = vector.shape_cast %15 : vector<1x1x16x8xf32> to vector<16x8xf32>
    %c80 = arith.constant 80 : index
    %c0_24 = arith.constant 0 : index
    %17 = vector.load %arg8[%c80, %c0_24] : memref<256x8xf32, #tpu.memory_space<vmem>>, vector<16x8xf32>
    tpu.vector_store %arg8[%c80, %c0_24], %16 {strides = array<i32>} : memref<256x8xf32, #tpu.memory_space<vmem>>, vector<16x8xf32>,
    %c0_25 = arith.constant 0 : index
    %c0_26 = arith.constant 0 : index
    %c0_27 = arith.constant 0 : index
    %c6 = arith.constant 6 : index
    %18 = vector.load %arg4[%c0_25, %c0_26, %c0_27, %c6] : memref<1x2x16x15xf32, #tpu.memory_space<vmem>>, vector<1x1x16x8xf32>
    %19 = vector.shape_cast %18 : vector<1x1x16x8xf32> to vector<16x8xf32>
    %c96 = arith.constant 96 : index
    %c0_28 = arith.constant 0 : index
    %20 = vector.load %arg8[%c96, %c0_28] : memref<256x8xf32, #tpu.memory_space<vmem>>, vector<16x8xf32>
    tpu.vector_store %arg8[%c96, %c0_28], %19 {strides = array<i32>} : memref<256x8xf32, #tpu.memory_space<vmem>>, vector<16x8xf32>,
    %c0_29 = arith.constant 0 : index
    %c0_30 = arith.constant 0 : index
    %c0_31 = arith.constant 0 : index
    %c7 = arith.constant 7 : index
    %21 = vector.load %arg4[%c0_29, %c0_30, %c0_31, %c7] : memref<1x2x16x15xf32, #tpu.memory_space<vmem>>, vector<1x1x16x8xf32>
    %22 = vector.shape_cast %21 : vector<1x1x16x8xf32> to vector<16x8xf32>
    %c112 = arith.constant 112 : index
    %c0_32 = arith.constant 0 : index
    %23 = vector.load %arg8[%c112, %c0_32] : memref<256x8xf32, #tpu.memory_space<vmem>>, vector<16x8xf32>
    tpu.vector_store %arg8[%c112, %c0_32], %22 {strides = array<i32>} : memref<256x8xf32, #tpu.memory_space<vmem>>, vector<16x8xf32>,
    %c0_33 = arith.constant 0 : index
    %c1_34 = arith.constant 1 : index
    %c0_35 = arith.constant 0 : index
    %c0_36 = arith.constant 0 : index
    %24 = vector.load %arg4[%c0_33, %c1_34, %c0_35, %c0_36] : memref<1x2x16x15xf32, #tpu.memory_space<vmem>>, vector<1x1x16x8xf32>
    %25 = vector.shape_cast %24 : vector<1x1x16x8xf32> to vector<16x8xf32>
    %c128 = arith.constant 128 : index
    %c0_37 = arith.constant 0 : index
    %26 = vector.load %arg8[%c128, %c0_37] : memref<256x8xf32, #tpu.memory_space<vmem>>, vector<16x8xf32>
    tpu.vector_store %arg8[%c128, %c0_37], %25 {strides = array<i32>} : memref<256x8xf32, #tpu.memory_space<vmem>>, vector<16x8xf32>,
    %c0_38 = arith.constant 0 : index
    %c1_39 = arith.constant 1 : index
    %c0_40 = arith.constant 0 : index
    %c1_41 = arith.constant 1 : index
    %27 = vector.load %arg4[%c0_38, %c1_39, %c0_40, %c1_41] : memref<1x2x16x15xf32, #tpu.memory_space<vmem>>, vector<1x1x16x8xf32>
    %28 = vector.shape_cast %27 : vector<1x1x16x8xf32> to vector<16x8xf32>
    %c144 = arith.constant 144 : index
    %c0_42 = arith.constant 0 : index
    %29 = vector.load %arg8[%c144, %c0_42] : memref<256x8xf32, #tpu.memory_space<vmem>>, vector<16x8xf32>
    tpu.vector_store %arg8[%c144, %c0_42], %28 {strides = array<i32>} : memref<256x8xf32, #tpu.memory_space<vmem>>, vector<16x8xf32>,
    %c0_43 = arith.constant 0 : index
    %c1_44 = arith.constant 1 : index
    %c0_45 = arith.constant 0 : index
    %c2_46 = arith.constant 2 : index
    %30 = vector.load %arg4[%c0_43, %c1_44, %c0_45, %c2_46] : memref<1x2x16x15xf32, #tpu.memory_space<vmem>>, vector<1x1x16x8xf32>
    %31 = vector.shape_cast %30 : vector<1x1x16x8xf32> to vector<16x8xf32>
    %c160 = arith.constant 160 : index
    %c0_47 = arith.constant 0 : index
    %32 = vector.load %arg8[%c160, %c0_47] : memref<256x8xf32, #tpu.memory_space<vmem>>, vector<16x8xf32>
    tpu.vector_store %arg8[%c160, %c0_47], %31 {strides = array<i32>} : memref<256x8xf32, #tpu.memory_space<vmem>>, vector<16x8xf32>,
    %c0_48 = arith.constant 0 : index
    %c1_49 = arith.constant 1 : index
    %c0_50 = arith.constant 0 : index
    %c3_51 = arith.constant 3 : index
    %33 = vector.load %arg4[%c0_48, %c1_49, %c0_50, %c3_51] : memref<1x2x16x15xf32, #tpu.memory_space<vmem>>, vector<1x1x16x8xf32>
    %34 = vector.shape_cast %33 : vector<1x1x16x8xf32> to vector<16x8xf32>
    %c176 = arith.constant 176 : index
    %c0_52 = arith.constant 0 : index
    %35 = vector.load %arg8[%c176, %c0_52] : memref<256x8xf32, #tpu.memory_space<vmem>>, vector<16x8xf32>
    tpu.vector_store %arg8[%c176, %c0_52], %34 {strides = array<i32>} : memref<256x8xf32, #tpu.memory_space<vmem>>, vector<16x8xf32>,
    %c0_53 = arith.constant 0 : index
    %c1_54 = arith.constant 1 : index
    %c0_55 = arith.constant 0 : index
    %c4_56 = arith.constant 4 : index
    %36 = vector.load %arg4[%c0_53, %c1_54, %c0_55, %c4_56] : memref<1x2x16x15xf32, #tpu.memory_space<vmem>>, vector<1x1x16x8xf32>
    %37 = vector.shape_cast %36 : vector<1x1x16x8xf32> to vector<16x8xf32>
    %c192 = arith.constant 192 : index
    %c0_57 = arith.constant 0 : index
    %38 = vector.load %arg8[%c192, %c0_57] : memref<256x8xf32, #tpu.memory_space<vmem>>, vector<16x8xf32>
    tpu.vector_store %arg8[%c192, %c0_57], %37 {strides = array<i32>} : memref<256x8xf32, #tpu.memory_space<vmem>>, vector<16x8xf32>,
    %c0_58 = arith.constant 0 : index
    %c1_59 = arith.constant 1 : index
    %c0_60 = arith.constant 0 : index
    %c5_61 = arith.constant 5 : index
    %39 = vector.load %arg4[%c0_58, %c1_59, %c0_60, %c5_61] : memref<1x2x16x15xf32, #tpu.memory_space<vmem>>, vector<1x1x16x8xf32>
    %40 = vector.shape_cast %39 : vector<1x1x16x8xf32> to vector<16x8xf32>
    %c208 = arith.constant 208 : index
    %c0_62 = arith.constant 0 : index
    %41 = vector.load %arg8[%c208, %c0_62] : memref<256x8xf32, #tpu.memory_space<vmem>>, vector<16x8xf32>
    tpu.vector_store %arg8[%c208, %c0_62], %40 {strides = array<i32>} : memref<256x8xf32, #tpu.memory_space<vmem>>, vector<16x8xf32>,
    %c0_63 = arith.constant 0 : index
    %c1_64 = arith.constant 1 : index
    %c0_65 = arith.constant 0 : index
    %c6_66 = arith.constant 6 : index
    %42 = vector.load %arg4[%c0_63, %c1_64, %c0_65, %c6_66] : memref<1x2x16x15xf32, #tpu.memory_space<vmem>>, vector<1x1x16x8xf32>
    %43 = vector.shape_cast %42 : vector<1x1x16x8xf32> to vector<16x8xf32>
    %c224 = arith.constant 224 : index
    %c0_67 = arith.constant 0 : index
    %44 = vector.load %arg8[%c224, %c0_67] : memref<256x8xf32, #tpu.memory_space<vmem>>, vector<16x8xf32>
    tpu.vector_store %arg8[%c224, %c0_67], %43 {strides = array<i32>} : memref<256x8xf32, #tpu.memory_space<vmem>>, vector<16x8xf32>,
    %c0_68 = arith.constant 0 : index
    %c1_69 = arith.constant 1 : index
    %c0_70 = arith.constant 0 : index
    %c7_71 = arith.constant 7 : index
    %45 = vector.load %arg4[%c0_68, %c1_69, %c0_70, %c7_71] : memref<1x2x16x15xf32, #tpu.memory_space<vmem>>, vector<1x1x16x8xf32>
    %46 = vector.shape_cast %45 : vector<1x1x16x8xf32> to vector<16x8xf32>
    %c240 = arith.constant 240 : index
    %c0_72 = arith.constant 0 : index
    %47 = vector.load %arg8[%c240, %c0_72] : memref<256x8xf32, #tpu.memory_space<vmem>>, vector<16x8xf32>
    tpu.vector_store %arg8[%c240, %c0_72], %46 {strides = array<i32>} : memref<256x8xf32, #tpu.memory_space<vmem>>, vector<16x8xf32>,
    %c0_73 = arith.constant 0 : index
    %c0_74 = arith.constant 0 : index
    %48 = vector.load %arg5[%c0_73, %c0_74] : memref<32x256xf32, #tpu.memory_space<vmem>>, vector<32x256xf32>
    %c0_75 = arith.constant 0 : index
    %c0_76 = arith.constant 0 : index
    %49 = vector.load %arg8[%c0_75, %c0_76] : memref<256x8xf32, #tpu.memory_space<vmem>>, vector<256x8xf32>
    %cst = arith.constant dense<0.000000e+00> : vector<32x8xf32>
    %50 = tpu.matmul %48, %49, %cst {dimension_numbers = #tpu.dot_dimension_numbers<[1], [0], [0], [1], [0, 0, 1, 1], [], []>} : vector<32x256xf32>, vector<256x8xf32>, vector<32x8xf32> -> vector<32x8xf32>
    %c0_77 = arith.constant 0 : index
    %c0_78 = arith.constant 0 : index
    %51 = vector.load %arg6[%c0_77, %c0_78] : memref<32x1xf32, #tpu.memory_space<vmem>>, vector<32x1xf32>
    %52 = vector.broadcast %51 : vector<32x1xf32> to vector<32x8xf32>
    %53 = arith.addf %50, %52 : vector<32x8xf32>
    %cst_79 = arith.constant 0.000000e+00 : f32
    %54 = vector.broadcast %cst_79 : f32 to vector<32x8xf32>
    %55 = arith.cmpf oge, %53, %54 : vector<32x8xf32>
    %cst_80 = arith.constant 2.000000e-01 : f32
    %56 = vector.broadcast %cst_80 : f32 to vector<32x8xf32>
    %57 = arith.mulf %56, %53 : vector<32x8xf32>
    %58 = arith.select %55, %53, %57 : vector<32x8xi1>, vector<32x8xf32>
    %c0_81 = arith.constant 0 : index
    %c2_82 = arith.constant 2 : index
    %59 = vector.load %arg9[%c0_81, %c2_82] : memref<32x12xf32, #tpu.memory_space<vmem>>, vector<32x8xf32>
    tpu.vector_store %arg9[%c0_81, %c2_82], %58 {strides = array<i32>} : memref<32x12xf32, #tpu.memory_space<vmem>>, vector<32x8xf32>,
    %60 = vector.extract_strided_slice %58 {offsets = [0, 2], sizes = [32, 1], strides = [1, 1]} : vector<32x8xf32> to vector<32x1xf32>
    %c0_83 = arith.constant 0 : index
    %c0_84 = arith.constant 0 : index
    %61 = vector.load %arg9[%c0_83, %c0_84] : memref<32x12xf32, #tpu.memory_space<vmem>>, vector<32x1xf32>
    tpu.vector_store %arg9[%c0_83, %c0_84], %60 {strides = array<i32>} : memref<32x12xf32, #tpu.memory_space<vmem>>, vector<32x1xf32>,
    %62 = vector.extract_strided_slice %58 {offsets = [0, 6], sizes = [32, 1], strides = [1, 1]} : vector<32x8xf32> to vector<32x1xf32>
    %c0_85 = arith.constant 0 : index
    %c10 = arith.constant 10 : index
    %63 = vector.load %arg9[%c0_85, %c10] : memref<32x12xf32, #tpu.memory_space<vmem>>, vector<32x1xf32>
    tpu.vector_store %arg9[%c0_85, %c10], %62 {strides = array<i32>} : memref<32x12xf32, #tpu.memory_space<vmem>>, vector<32x1xf32>,
    %64 = vector.extract_strided_slice %58 {offsets = [0, 1], sizes = [32, 1], strides = [1, 1]} : vector<32x8xf32> to vector<32x1xf32>
    %c0_86 = arith.constant 0 : index
    %c1_87 = arith.constant 1 : index
    %65 = vector.load %arg9[%c0_86, %c1_87] : memref<32x12xf32, #tpu.memory_space<vmem>>, vector<32x1xf32>
    tpu.vector_store %arg9[%c0_86, %c1_87], %64 {strides = array<i32>} : memref<32x12xf32, #tpu.memory_space<vmem>>, vector<32x1xf32>,
    %66 = vector.extract_strided_slice %58 {offsets = [0, 5], sizes = [32, 1], strides = [1, 1]} : vector<32x8xf32> to vector<32x1xf32>
    %c0_88 = arith.constant 0 : index
    %c11 = arith.constant 11 : index
    %67 = vector.load %arg9[%c0_88, %c11] : memref<32x12xf32, #tpu.memory_space<vmem>>, vector<32x1xf32>
    tpu.vector_store %arg9[%c0_88, %c11], %66 {strides = array<i32>} : memref<32x12xf32, #tpu.memory_space<vmem>>, vector<32x1xf32>,
    %68 = arith.index_cast %arg0 : i32 to index
    %69 = memref.load %arg3[%68] : memref<2xi32, #tpu.memory_space<smem>>
    %c0_89 = arith.constant 0 : index
    %c2_90 = arith.constant 2 : index
    %70 = vector.load %arg9[%c0_89, %c2_90] : memref<32x12xf32, #tpu.memory_space<vmem>>, vector<32x8xf32>
    %c-2_i32 = arith.constant -2 : i32
    %71 = arith.cmpi eq, %69, %c-2_i32 : i32
    %c0_91 = arith.constant 0 : index
    %c4_92 = arith.constant 4 : index
    %72 = vector.load %arg9[%c0_91, %c4_92] : memref<32x12xf32, #tpu.memory_space<vmem>>, vector<32x8xf32>
    %73 = arith.select %71, %72, %70 : vector<32x8xf32>
    %c-1_i32 = arith.constant -1 : i32
    %74 = arith.cmpi eq, %69, %c-1_i32 : i32
    %c0_93 = arith.constant 0 : index
    %c3_94 = arith.constant 3 : index
    %75 = vector.load %arg9[%c0_93, %c3_94] : memref<32x12xf32, #tpu.memory_space<vmem>>, vector<32x8xf32>
    %76 = arith.select %74, %75, %73 : vector<32x8xf32>
    %c1_i32 = arith.constant 1 : i32
    %77 = arith.cmpi eq, %69, %c1_i32 : i32
    %c0_95 = arith.constant 0 : index
    %c1_96 = arith.constant 1 : index
    %78 = vector.load %arg9[%c0_95, %c1_96] : memref<32x12xf32, #tpu.memory_space<vmem>>, vector<32x8xf32>
    %79 = arith.select %77, %78, %76 : vector<32x8xf32>
    %c2_i32 = arith.constant 2 : i32
    %80 = arith.cmpi eq, %69, %c2_i32 : i32
    %c0_97 = arith.constant 0 : index
    %c0_98 = arith.constant 0 : index
    %81 = vector.load %arg9[%c0_97, %c0_98] : memref<32x12xf32, #tpu.memory_space<vmem>>, vector<32x8xf32>
    %82 = arith.select %80, %81, %79 : vector<32x8xf32>
    %c0_99 = arith.constant 0 : index
    %c0_100 = arith.constant 0 : index
    %c0_101 = arith.constant 0 : index
    %83 = vector.load %arg7[%c0_99, %c0_100, %c0_101] : memref<1x32x8xf32, #tpu.memory_space<vmem>>, vector<1x32x8xf32>
    %84 = vector.shape_cast %83 : vector<1x32x8xf32> to vector<32x8xf32>
    %85 = vector.shape_cast %82 : vector<32x8xf32> to vector<1x32x8xf32>
    tpu.vector_store %arg7[%c0_99, %c0_100, %c0_101], %85 {strides = array<i32>} : memref<1x32x8xf32, #tpu.memory_space<vmem>>, vector<1x32x8xf32>,
    return
  }
  func.func @transform_0(%arg0: i32, %arg1: i32, %arg2: i32, %arg3: memref<2xi32, #tpu.memory_space<smem>>) -> (i32, i32, i32, i32) {
    %c0_i32 = arith.constant 0 : i32
    %c0_i32_0 = arith.constant 0 : i32
    %c0_i32_1 = arith.constant 0 : i32
    %c0_i32_2 = arith.constant 0 : i32
    return %arg0, %c0_i32, %c0_i32_0, %c0_i32_1 : i32, i32, i32, i32
  }
  func.func @transform_1(%arg0: i32, %arg1: i32, %arg2: i32, %arg3: memref<2xi32, #tpu.memory_space<smem>>) -> (i32, i32) {
    %c0_i32 = arith.constant 0 : i32
    %c0_i32_0 = arith.constant 0 : i32
    return %arg1, %c0_i32 : i32, i32
  }
  func.func @transform_2(%arg0: i32, %arg1: i32, %arg2: i32, %arg3: memref<2xi32, #tpu.memory_space<smem>>) -> (i32, i32) {
    %c0_i32 = arith.constant 0 : i32
    %c0_i32_0 = arith.constant 0 : i32
    return %arg1, %c0_i32 : i32, i32
  }
  func.func @transform_3(%arg0: i32, %arg1: i32, %arg2: i32, %arg3: memref<2xi32, #tpu.memory_space<smem>>) -> (i32, i32, i32) {
    %c0_i32 = arith.constant 0 : i32
    return %arg0, %arg1, %arg2 : i32, i32, i32
  }
}

module attributes {stable_mosaic.version = 11 : i64} {
  func.func @_fc_kernel(%arg0: i32, %arg1: memref<2x32x8xf32, #tpu.memory_space<vmem>>, %arg2: memref<32x8xf32, #tpu.memory_space<vmem>>, %arg3: memref<1x1xf32, #tpu.memory_space<vmem>>, %arg4: memref<2x1xf32, #tpu.memory_space<vmem>>) attributes {dimension_semantics = [#tpu.dimension_semantics<arbitrary>], iteration_bounds = array<i64: 1>, scalar_prefetch = 0 : i64, scratch_operands = 0 : i64, tpu.core_type = #tpu.core_type<tc>, window_params = [{pipeline_mode = #tpu.pipeline_mode<synchronous>, transform_indices = @transform_0, window_bounds = array<i64: 2, 32, 8>}, {pipeline_mode = #tpu.pipeline_mode<synchronous>, transform_indices = @transform_1, window_bounds = array<i64: 32, 8>}, {pipeline_mode = #tpu.pipeline_mode<synchronous>, transform_indices = @transform_2, window_bounds = array<i64: 1, 1>}, {pipeline_mode = #tpu.pipeline_mode<synchronous>, transform_indices = @transform_3, window_bounds = array<i64: 2, 1>}]} {
    %c0 = arith.constant 0 : index
    %c0_0 = arith.constant 0 : index
    %c0_1 = arith.constant 0 : index
    %0 = vector.load %arg1[%c0, %c0_0, %c0_1] : memref<2x32x8xf32, #tpu.memory_space<vmem>>, vector<2x32x8xf32>
    %c0_2 = arith.constant 0 : index
    %c0_3 = arith.constant 0 : index
    %1 = vector.load %arg2[%c0_2, %c0_3] : memref<32x8xf32, #tpu.memory_space<vmem>>, vector<32x8xf32>
    %2 = vector.shape_cast %1 : vector<32x8xf32> to vector<1x32x8xf32>
    %3 = vector.broadcast %2 : vector<1x32x8xf32> to vector<2x32x8xf32>
    %4 = arith.mulf %0, %3 : vector<2x32x8xf32>
    %cst = arith.constant dense<0.000000e+00> : vector<2x32xf32>
    %5 = vector.multi_reduction <add>, %4, %cst [2] : vector<2x32x8xf32> to vector<2x32xf32>
    %cst_4 = arith.constant dense<0.000000e+00> : vector<2xf32>
    %6 = vector.multi_reduction <add>, %5, %cst_4 [1] : vector<2x32xf32> to vector<2xf32>
    %7 = vector.shape_cast %6 : vector<2xf32> to vector<2x1xf32>
    %c0_5 = arith.constant 0 : index
    %c0_6 = arith.constant 0 : index
    %8 = vector.load %arg3[%c0_5, %c0_6] : memref<1x1xf32, #tpu.memory_space<vmem>>, vector<1x1xf32>
    %9 = vector.broadcast %8 : vector<1x1xf32> to vector<2x1xf32>
    %10 = arith.addf %7, %9 : vector<2x1xf32>
    %c0_7 = arith.constant 0 : index
    %c0_8 = arith.constant 0 : index
    %11 = vector.load %arg4[%c0_7, %c0_8] : memref<2x1xf32, #tpu.memory_space<vmem>>, vector<2x1xf32>
    tpu.vector_store %arg4[%c0_7, %c0_8], %10 {strides = array<i32>} : memref<2x1xf32, #tpu.memory_space<vmem>>, vector<2x1xf32>,
    return
  }
  func.func @transform_0(%arg0: i32) -> (i32, i32, i32) {
    %c0_i32 = arith.constant 0 : i32
    %c0_i32_0 = arith.constant 0 : i32
    %c0_i32_1 = arith.constant 0 : i32
    %c0_i32_2 = arith.constant 0 : i32
    return %c0_i32, %c0_i32_0, %c0_i32_1 : i32, i32, i32
  }
  func.func @transform_1(%arg0: i32) -> (i32, i32) {
    %c0_i32 = arith.constant 0 : i32
    %c0_i32_0 = arith.constant 0 : i32
    %c0_i32_1 = arith.constant 0 : i32
    return %c0_i32, %c0_i32_0 : i32, i32
  }
  func.func @transform_2(%arg0: i32) -> (i32, i32) {
    %c0_i32 = arith.constant 0 : i32
    %c0_i32_0 = arith.constant 0 : i32
    %c0_i32_1 = arith.constant 0 : i32
    return %c0_i32, %c0_i32_0 : i32, i32
  }
  func.func @transform_3(%arg0: i32) -> (i32, i32) {
    %c0_i32 = arith.constant 0 : i32
    %c0_i32_0 = arith.constant 0 : i32
    %c0_i32_1 = arith.constant 0 : i32
    return %c0_i32, %c0_i32_0 : i32, i32
  }
}

</mosaic_0001>

<bundles_post_ra>
// kernel: wavegan_discriminator_fwd.5
= control target key start
LH: loop header
LB: loop body
LE: loop exit
PB: predicated region body
PF: predicated region fallthrough
CT: control target
= control target key end

     0   :  { %s1008_s0 = inlined_call_operand.vmem [shape: s32[2], index: 0, kind: input, shape index: {}]   ;;  %s1009_s1 = inlined_call_operand.vmem [shape: f32[2,2,8,23], index: 1, kind: input, shape index: {}]   ;;  %s1010_s2 = inlined_call_operand.vmem [shape: f32[16,128], index: 2, kind: input, shape index: {}]   ;;  %s1011_s3 = inlined_call_operand.vmem [shape: f32[16,1], index: 3, kind: input, shape index: {}]   ;;  %s1012_s4 = inlined_call_operand.vmem [shape: f32[2,16,16], index: 4, kind: output, shape index: {}]  }
   0x1   :  { %s9_s17 = sshll.u32 %s1008_s0, 4  ;;  %s10_s17 = int_to_ptr.vmem [resolvable:$true] %s9_s17 }
   0x2   :  { %s833_s18 = scalar_lea.vmem %s10_s17, 16  ;;  %p838_p1 = scmp.lt.s32.totalorder %s10_s17, %s10_s17 }
   0x3   :  { %p834_p0 = scmp.ne.s32.totalorder %s10_s17, %s833_s18  ;;  %p839_p2 = scmp.lt.s32.totalorder %s833_s18, %s833_s18 }
   0x5   :  { %p840_p3 = por %p839_p2, %p838_p1 }
   0x7   :  { %p841_p4 = pnand %p840_p3, %p834_p0 }
   0x9   :  { %844 = shalt.err (!%p841_p4)  }
   0xa   :  { %s871_s19 = smov [#allocation5]  }
   0xb   :  { %12 = dma.vmem_to_smem %s10_s17, 16, %s871_s19, [#allocation4] }
   0xc   :  { %857 = dma.done.wait [#allocation4], 16 }
   0xd   :  { %858 = vsyncadd [#allocation4], 4294967280 }
   0xe   :  { %14 = sfence }
   0xf   :  { %s911_s20 = smov 0   ;;  %s913_s21 = smov 0  }
  0x10   :  { %s915_s22 = smov 0  }
  0x11 LB: > { %s39_s0 = sadd.s32 1, %s865_s21  ;;  %p693_p5 = scmp.ge.s32.totalorder %s869_s22, 1  ;;  %s869_s22 = sphi %s915_s22, %s20_s22   ;;  %s865_s21 = sphi %s913_s21, %s1014_s21   ;;  %s861_s20 = sphi %s911_s20, %s1013_s20  }
  0x12   : > { %p41_p6 = scmp.ge.s32.totalorder %s39_s0, 2  ;;  %p189_p7 = scmp.lt.s32.totalorder %s869_s22, 3 }
  0x14   : > { %s1016_s0 = smov (%p41_p6, %s39_s0), 0  ;;  %p190_p8 = pnand %p693_p5, %p189_p7 }
  0x15   : > { %p230_p9 = scmp.lt.s32.totalorder (!%p190_p8), %s861_s20, 1  ;;  %vm261_vm0 = vcmask (!%p190_p8), 130048   ;;  %s872_s28 = smov (!%p190_p8), 127   ;;  %v350_v2 = vld [vmem:[%s1010_s2] sm:$0xff] (!%p190_p8)  ;;  %v369_v3 = vld [vmem:[%s1011_s3 + $0x8] sm:$0xff] (!%p190_p8)  ;;  %v879_v5 = vmov (!%p190_p8), 0  }
  0x16   : > { %193 = sbr.rel (%p190_p8) target bundleno = 1009 (0x3f1), region = 32  ;;  %s873_s29 = smov (!%p190_p8), 125   ;;  %760 = vmatprep.mubr.f32.mxu0 (!%p190_p8), %v350_v2  ;;  %v368_v4 = vld [vmem:[%s1011_s3] sm:$0xff] (!%p190_p8)  ;;  %832 = vset.pattern.permute.xlu1 (!%p190_p8), %v879_v5  ;;  %v351_v44 = vld [vmem:[%s1010_s2 + $0x8] sm:$0xff] (!%p190_p8)  ;;  %vm469_vm3 = vcmask (!%p190_p8), 146448   ;;  %vm478_vm4 = vcmask (!%p190_p8), 7168  }
  0x17   : > { %s874_s30 = smov (!%p190_p8), 126   ;;  %s875_s5 = smov (!%p190_p8), 124   ;;  %831 = vset.pattern.permute.xlu0 (!%p190_p8), %v879_v5  ;;  %vm487_vm5 = vcmask (!%p190_p8), 154768   ;;  %vm490_vm6 = vcmask (!%p190_p8), 15368   ;;  %vm499_vm7 = vcmask (!%p190_p8), 162968  }
  0x18   : > { %s876_s6 = smov (!%p190_p8), 123   ;;  %s877_s7 = smov (!%p190_p8), 122  }
  0x19   : > { %s878_s8 = smov (!%p190_p8), 121   ;;  %s880_s17 = smov (!%p190_p8), 2  }
  0x1a   : > { %s881_s18 = smov (!%p190_p8), 4   ;;  %s882_s19 = smov (!%p190_p8), 6  }
  0x1b   : > { %s980_s25 = sld [smem:[#allocation5 + %s861_s20]] (!%p190_p8) }
  0x1d   : > { %s933_s23 = scalar_select %p230_p9, %s861_s20, 1 }
  0x1f   : > { %s708_s24 = sshll.u32 %s933_s23, 4 }
  0x20   : > { %s234_s27 = scalar_lea.vmem %s1009_s1, %s708_s24 }
  0x21   : > { %v263_v0 = vld [vmem:[%s234_s27] sm:$0xff]  ;;  %v699_v1 = vld [vmem:[%s234_s27 + $0x8] sm:$0xff]  ;;  %p505_p10 = scmp.eq.s32.totalorder %s980_s25, 4294967294  ;;  %p519_p11 = scmp.eq.s32.totalorder %s980_s25, 4294967295 }
  0x22   : > { %265 = vrot.lane.b32.xlu0 %v263_v0, %s872_s28  ;;  %277 = vrot.lane.b32.xlu1 %v263_v0, %s873_s29  ;;  %262 = vst.msk [vmem:[#allocation2] sm:$0xff] %vm261_vm0, %v263_v0  ;;  %307 = vst.msk [vmem:[#allocation2 + $0x40] sm:$0xff] %vm261_vm0, %v699_v1  ;;  %p533_p12 = scmp.eq.s32.totalorder %s980_s25, 1  ;;  %p547_p13 = scmp.eq.s32.totalorder %s980_s25, 2 }
  0x23   : > { %s506_s26 = scalar_select %p505_p10, 1, 0 }
  0x24   : > { %s520_s27 = scalar_select %p519_p11, 1, 0 }
  0x25   : > { %s534_s20 = scalar_select %p533_p12, 1, 0 }
  0x26   : > { %271 = vrot.lane.b32.xlu0 %v263_v0, %s874_s30  ;;  %283 = vrot.lane.b32.xlu1 %v263_v0, %s875_s5 }
  0x29   : > { %v352_v10 = vld [vmem:[#allocation2] sm:$0xff] }
  0x2a   : > { %289 = vrot.lane.b32.xlu0 %v263_v0, %s876_s6  ;;  %295 = vrot.lane.b32.xlu1 %v263_v0, %s877_s7  ;;  %v360_v26 = vld [vmem:[#allocation2 + $0x40] sm:$0xff] }
  0x2e   : > { %301 = vrot.lane.b32.xlu0 %v263_v0, %s878_s8  ;;  %310 = vrot.lane.b32.xlu1 %v699_v1, %s872_s28 }
  0x32   : > { %322 = vrot.lane.b32.xlu1 %v699_v1, %s873_s29  ;;  %316 = vrot.lane.b32.xlu0 %v699_v1, %s874_s30  ;;  %s548_s29 = scalar_select %p547_p13, 1, 0 }
  0x36   : > { %334 = vrot.lane.b32.xlu1 %v699_v1, %s876_s6  ;;  %328 = vrot.lane.b32.xlu0 %v699_v1, %s875_s5 }
  0x3a   : > { %346 = vrot.lane.b32.xlu1 %v699_v1, %s878_s8  ;;  %340 = vrot.lane.b32.xlu0 %v699_v1, %s877_s7  ;;  %v507_v1 = vstv %s506_s26 }
  0x3b   : > { %vm508_vm8 = vcmp.eq.s32.totalorder %v507_v1, 1 }
  0x3e   : > { %377 = vperm.xlu1 %832, %v369_v3   ;;  %372 = vperm.xlu0 %831, %v368_v4  }
  0x94   : > { %v266_v6 = vpop.permute.xlu0 %265  ;;  %v278_v7 = vpop.permute.xlu1 %277 }
  0x95   : > { %268 = vst.msk [vmem:[#allocation2 + $0x8] sm:$0xff] %vm261_vm0, %v266_v6  ;;  %280 = vst.msk [vmem:[#allocation2 + $0x18] sm:$0xff] %vm261_vm0, %v278_v7  ;;  %v521_v6 = vstv %s520_s27 }
  0x96   : > { %vm522_vm9 = vcmp.eq.s32.totalorder %v521_v6, 1 }
  0x98   : > { %v272_v8 = vpop.permute.xlu0 %271  ;;  %v284_v9 = vpop.permute.xlu1 %283 }
  0x99   : > { %274 = vst.msk [vmem:[#allocation2 + $0x10] sm:$0xff] %vm261_vm0, %v272_v8  ;;  %286 = vst.msk [vmem:[#allocation2 + $0x20] sm:$0xff] %vm261_vm0, %v284_v9 }
  0x9c   : > { %v290_v11 = vpop.permute.xlu0 %289  ;;  %v353_v12 = vld [vmem:[#allocation2 + $0x8] sm:$0xff]  ;;  %v296_v13 = vpop.permute.xlu1 %295  ;;  %v355_v15 = vld [vmem:[#allocation2 + $0x18] sm:$0xff] }
  0x9d   : > { %292 = vst.msk [vmem:[#allocation2 + $0x28] sm:$0xff] %vm261_vm0, %v290_v11  ;;  %v763_v14 = vpack.c.bf16 %v353_v12, %v352_v10  ;;  %298 = vst.msk [vmem:[#allocation2 + $0x30] sm:$0xff] %vm261_vm0, %v296_v13  ;;  %v535_v11 = vstv %s534_s20 }
  0x9e   : > { %vm536_vm10 = vcmp.eq.s32.totalorder %v535_v11, 1 }
  0x9f   : > { %764 = vmatprep.subr.bf16.mxu0 %v763_v14 }
  0xa0   : > { %v302_v16 = vpop.permute.xlu0 %301  ;;  %766 = vmatpush3.bf16.msra.mxu0 %v763_v14  ;;  %v354_v17 = vld [vmem:[#allocation2 + $0x10] sm:$0xff]  ;;  %v311_v18 = vpop.permute.xlu1 %310  ;;  %v356_v20 = vld [vmem:[#allocation2 + $0x20] sm:$0xff] }
  0xa1   : > { %304 = vst.msk [vmem:[#allocation2 + $0x38] sm:$0xff] %vm261_vm0, %v302_v16  ;;  %v767_v19 = vpack.c.bf16 %v355_v15, %v354_v17  ;;  %313 = vst.msk [vmem:[#allocation2 + $0x48] sm:$0xff] %vm261_vm0, %v311_v18  ;;  %v549_v16 = vstv %s548_s29 }
  0xa2   : > { %vm550_vm11 = vcmp.eq.s32.totalorder %v549_v16, 1 }
  0xa3   : > { %768 = vmatprep.subr.bf16.mxu0 %v767_v19 }
  0xa4   : > { %770 = vmatpush3.bf16.msra.mxu0 %v767_v19  ;;  %v357_v21 = vld [vmem:[#allocation2 + $0x28] sm:$0xff]  ;;  %v323_v22 = vpop.permute.xlu1 %322  ;;  %v317_v23 = vpop.permute.xlu0 %316  ;;  %v358_v25 = vld [vmem:[#allocation2 + $0x30] sm:$0xff] }
  0xa5   : > { %v771_v24 = vpack.c.bf16 %v357_v21, %v356_v20  ;;  %325 = vst.msk [vmem:[#allocation2 + $0x58] sm:$0xff] %vm261_vm0, %v323_v22  ;;  %319 = vst.msk [vmem:[#allocation2 + $0x50] sm:$0xff] %vm261_vm0, %v317_v23 }
  0xa7   : > { %772 = vmatprep.subr.bf16.mxu0 %v771_v24 }
  0xa8   : > { %774 = vmatpush3.bf16.msra.mxu0 %v771_v24  ;;  %v359_v27 = vld [vmem:[#allocation2 + $0x38] sm:$0xff]  ;;  %v335_v28 = vpop.permute.xlu1 %334  ;;  %v329_v29 = vpop.permute.xlu0 %328  ;;  %v361_v30 = vld [vmem:[#allocation2 + $0x48] sm:$0xff] }
  0xa9   : > { %v775_v31 = vpack.c.bf16 %v359_v27, %v358_v25  ;;  %337 = vst.msk [vmem:[#allocation2 + $0x68] sm:$0xff] %vm261_vm0, %v335_v28  ;;  %331 = vst.msk [vmem:[#allocation2 + $0x60] sm:$0xff] %vm261_vm0, %v329_v29  ;;  %v779_v32 = vpack.c.bf16 %v361_v30, %v360_v26 }
  0xab   : > { %776 = vmatprep.subr.bf16.mxu0 %v775_v31 }
  0xac   : > { %778 = vmatpush3.bf16.msra.mxu0 %v775_v31  ;;  %v347_v33 = vpop.permute.xlu1 %346  ;;  %v341_v34 = vpop.permute.xlu0 %340  ;;  %v362_v35 = vld [vmem:[#allocation2 + $0x50] sm:$0xff]  ;;  %v363_v36 = vld [vmem:[#allocation2 + $0x58] sm:$0xff] }
  0xad   : > { %780 = vmatprep.subr.bf16.mxu0 %v779_v32  ;;  %349 = vst.msk [vmem:[#allocation2 + $0x78] sm:$0xff] %vm261_vm0, %v347_v33  ;;  %343 = vst.msk [vmem:[#allocation2 + $0x70] sm:$0xff] %vm261_vm0, %v341_v34  ;;  %v783_v37 = vpack.c.bf16 %v363_v36, %v362_v35 }
  0xb0   : > { %782 = vmatpush3.bf16.msra.mxu0 %v779_v32  ;;  %v364_v38 = vld [vmem:[#allocation2 + $0x60] sm:$0xff]  ;;  %v365_v39 = vld [vmem:[#allocation2 + $0x68] sm:$0xff] }
  0xb1   : > { %784 = vmatprep.subr.bf16.mxu0 %v783_v37  ;;  %v787_v40 = vpack.c.bf16 %v365_v39, %v364_v38 }
  0xb4   : > { %786 = vmatpush3.bf16.msra.mxu0 %v783_v37  ;;  %v366_v41 = vld [vmem:[#allocation2 + $0x70] sm:$0xff]  ;;  %v367_v42 = vld [vmem:[#allocation2 + $0x78] sm:$0xff] }
  0xb5   : > { %788 = vmatprep.subr.bf16.mxu0 %v787_v40  ;;  %v791_v43 = vpack.c.bf16 %v367_v42, %v366_v41 }
  0xb8   : > { %790 = vmatpush3.bf16.msra.mxu0 %v787_v40 }
  0xb9   : > { %792 = vmatprep.subr.bf16.mxu0 %v791_v43 }
  0xbc   : > { %794 = vmatpush3.bf16.msra.mxu0 %v791_v43 }
  0xbd   : > { %v378_v45 = vpop.permute.xlu1 %377  ;;  %v373_v46 = vpop.permute.xlu0 %372 }
  0xbf   : > { %761 = vmatmul.mubr.f32.vlgmr.msra.gmra.mrb[0].mxu0 %v351_v44 }
 0x192   : > { %v762_v47 = vpop.f32.mrb[0].mxu0 }
 0x193   : > { %v452_v48 = vadd.f32 %v762_v47, %v378_v45  ;;  %v446_v49 = vpop.f32.mrb[1].mxu0 }
 0x194   : > { %v447_v50 = vadd.f32 %v446_v49, %v373_v46 }
 0x195   : > { %vm456_vm1 = vcmp.ge.f32.partialorder %v452_v48, 0.0  ;;  %v458_v51 = vmul.f32 0.2, %v452_v48 }
 0x196   : > { %vm455_vm2 = vcmp.ge.f32.partialorder %v447_v50, 0.0  ;;  %v457_v52 = vmul.f32 0.2, %v447_v50 }
 0x197   : > { %v460_v53 = vsel %vm456_vm1, %v452_v48, %v458_v51 }
 0x198   : > { %v459_v54 = vsel %vm455_vm2, %v447_v50, %v457_v52  ;;  %465 = vrot.lane.b32.xlu0 %v460_v53, %s880_s17 }
 0x199   : > { %463 = vrot.lane.b32.xlu1 %v459_v54, %s880_s17 }
 0x19c   : > { %474 = vrot.lane.b32.xlu0 %v460_v53, %s874_s30 }
 0x19d   : > { %472 = vrot.lane.b32.xlu1 %v459_v54, %s874_s30 }
 0x1a0   : > { %483 = vrot.lane.b32.xlu0 %v460_v53, %s881_s18 }
 0x1a1   : > { %481 = vrot.lane.b32.xlu1 %v459_v54, %s881_s18 }
 0x1a4   : > { %495 = vrot.lane.b32.xlu0 %v460_v53, %s882_s19 }
 0x1a5   : > { %493 = vrot.lane.b32.xlu1 %v459_v54, %s882_s19 }
 0x20a   : > { %v466_v55 = vpop.permute.xlu0 %465 }
 0x20b   : > { %471 = vst.msk [vmem:[#allocation3 + $0x8] sm:$0xff] %vm469_vm3, %v466_v55  ;;  %v464_v56 = vpop.permute.xlu1 %463 }
 0x20c   : > { %470 = vst.msk [vmem:[#allocation3] sm:$0xff] %vm469_vm3, %v464_v56 }
 0x20e   : > { %v475_v57 = vpop.permute.xlu0 %474 }
 0x20f   : > { %480 = vst.msk [vmem:[#allocation3 + $0x8] sm:$0xff] %vm478_vm4, %v475_v57  ;;  %v473_v58 = vpop.permute.xlu1 %472 }
 0x210   : > { %479 = vst.msk [vmem:[#allocation3] sm:$0xff] %vm478_vm4, %v473_v58 }
 0x212   : > { %v484_v59 = vpop.permute.xlu0 %483 }
 0x213   : > { %489 = vst.msk [vmem:[#allocation3 + $0x8] sm:$0xff] %vm487_vm5, %v484_v59  ;;  %v482_v60 = vpop.permute.xlu1 %481 }
 0x214   : > { %488 = vst.msk [vmem:[#allocation3] sm:$0xff] %vm487_vm5, %v482_v60 }
 0x215   : > { %492 = vst.msk [vmem:[#allocation3 + $0x8] sm:$0xff] %vm490_vm6, %v460_v53  ;;  %491 = vst.msk [vmem:[#allocation3] sm:$0xff] %vm490_vm6, %v459_v54 }
 0x216   : > { %v496_v61 = vpop.permute.xlu0 %495 }
 0x217   : > { %501 = vst.msk [vmem:[#allocation3 + $0x8] sm:$0xff] %vm499_vm7, %v496_v61  ;;  %v494_v62 = vpop.permute.xlu1 %493 }
 0x218   : > { %500 = vst.msk [vmem:[#allocation3] sm:$0xff] %vm499_vm7, %v494_v62 }
 0x21e   : > { %v504_v63 = vld [vmem:[#allocation3 + $0x8] sm:$0xff] }
 0x21f   : > { %513 = vrot.lane.b32.xlu0 %v504_v63, %s880_s17  ;;  %v503_v0 = vld [vmem:[#allocation3] sm:$0xff] }
 0x220   : > { %511 = vrot.lane.b32.xlu1 %v503_v0, %s880_s17 }
 0x291   : > { %v514_v2 = vpop.permute.xlu0 %513 }
 0x292   : > { %v512_v3 = vpop.permute.xlu1 %511  ;;  %v518_v4 = vsel %vm508_vm8, %v504_v63, %v514_v2 }
 0x293   : > { %527 = vrot.lane.b32.xlu0 %v518_v4, %s872_s28  ;;  %v517_v5 = vsel %vm508_vm8, %v503_v0, %v512_v3 }
 0x294   : > { %525 = vrot.lane.b32.xlu1 %v517_v5, %s872_s28 }
 0x305   : > { %v528_v7 = vpop.permute.xlu0 %527 }
 0x306   : > { %v526_v8 = vpop.permute.xlu1 %525  ;;  %v532_v9 = vsel %vm522_vm9, %v504_v63, %v528_v7 }
 0x307   : > { %541 = vrot.lane.b32.xlu0 %v532_v9, %s874_s30  ;;  %v531_v10 = vsel %vm522_vm9, %v503_v0, %v526_v8 }
 0x308   : > { %539 = vrot.lane.b32.xlu1 %v531_v10, %s874_s30  ;;  %s258_s30 = scalar_lea.vmem %s1012_s4, %s708_s24 }
 0x379   : > { %v542_v12 = vpop.permute.xlu0 %541 }
 0x37a   : > { %v540_v13 = vpop.permute.xlu1 %539  ;;  %v546_v14 = vsel %vm536_vm10, %v504_v63, %v542_v12 }
 0x37b   : > { %555 = vrot.lane.b32.xlu0 %v546_v14, %s872_s28  ;;  %v545_v15 = vsel %vm536_vm10, %v503_v0, %v540_v13 }
 0x37c   : > { %553 = vrot.lane.b32.xlu1 %v545_v15, %s872_s28 }
 0x3ed   : > { %v556_v17 = vpop.permute.xlu0 %555 }
 0x3ee   : > { %v560_v18 = vsel %vm550_vm11, %v504_v63, %v556_v17  ;;  %v554_v19 = vpop.permute.xlu1 %553 }
 0x3ef   : > { %562 = vst.msk [vmem:[%s258_s30 + $0x8] sm:$0xff] %vm261_vm0, %v560_v18  ;;  %v559_v20 = vsel %vm550_vm11, %v503_v0, %v554_v19 }
 0x3f0   : > { %561 = vst.msk [vmem:[%s258_s30] sm:$0xff] %vm261_vm0, %v559_v20 }
 0x3f1 PF: > { %s20_s22 = sadd.s32 1, %s869_s22   ;;  %s1013_s20 = smov %s865_s21 }
 0x3f2   : > { %p17_p0 = scmp.ge.s32.totalorder %s20_s22, 4   ;;  %s1014_s21 = smov %s1016_s0 }
 0x3f4   :  { %19 = sbr.rel (!%p17_p0) target bundleno = 17 (0x11), region = 69 }

// kernel: wavegan_discriminator_fwd.4
= control target key start
LH: loop header
LB: loop body
LE: loop exit
PB: predicated region body
PF: predicated region fallthrough
CT: control target
= control target key end

     0   :  { %s892_s0 = inlined_call_operand.vmem [shape: s32[2], index: 0, kind: input, shape index: {}]   ;;  %s893_s1 = inlined_call_operand.vmem [shape: f32[2,2,1,39], index: 1, kind: input, shape index: {}]   ;;  %s894_s2 = inlined_call_operand.vmem [shape: f32[8,16], index: 2, kind: input, shape index: {}]   ;;  %s895_s3 = inlined_call_operand.vmem [shape: f32[8,1], index: 3, kind: input, shape index: {}]   ;;  %s896_s4 = inlined_call_operand.vmem [shape: f32[2,8,32], index: 4, kind: output, shape index: {}]  }
   0x1   :  { %s9_s17 = sshll.u32 %s892_s0, 4  ;;  %s10_s17 = int_to_ptr.vmem [resolvable:$true] %s9_s17 }
   0x2   :  { %s739_s18 = scalar_lea.vmem %s10_s17, 16  ;;  %p744_p1 = scmp.lt.s32.totalorder %s10_s17, %s10_s17 }
   0x3   :  { %p740_p0 = scmp.ne.s32.totalorder %s10_s17, %s739_s18  ;;  %p745_p2 = scmp.lt.s32.totalorder %s739_s18, %s739_s18 }
   0x5   :  { %p746_p3 = por %p745_p2, %p744_p1 }
   0x7   :  { %p747_p4 = pnand %p746_p3, %p740_p0 }
   0x9   :  { %750 = shalt.err (!%p747_p4)  }
   0xa   :  { %s777_s19 = smov [#allocation5]  }
   0xb   :  { %12 = dma.vmem_to_smem %s10_s17, 16, %s777_s19, [#allocation4] }
   0xc   :  { %763 = dma.done.wait [#allocation4], 16 }
   0xd   :  { %764 = vsyncadd [#allocation4], 4294967280 }
   0xe   :  { %14 = sfence }
   0xf   :  { %s820_s20 = smov 0   ;;  %s822_s21 = smov 0  }
  0x10   :  { %s824_s22 = smov 0  }
  0x11 LB: > { %s39_s0 = sadd.s32 1, %s771_s21  ;;  %p658_p5 = scmp.ge.s32.totalorder %s775_s22, 1  ;;  %s775_s22 = sphi %s824_s22, %s20_s22   ;;  %s771_s21 = sphi %s822_s21, %s898_s21   ;;  %s767_s20 = sphi %s820_s20, %s897_s20  }
  0x12   : > { %p41_p6 = scmp.ge.s32.totalorder %s39_s0, 2  ;;  %p184_p7 = scmp.lt.s32.totalorder %s775_s22, 3 }
  0x14   : > { %s900_s0 = smov (%p41_p6, %s39_s0), 0  ;;  %p185_p8 = pnand %p658_p5, %p184_p7 }
  0x15   : > { %p220_p9 = scmp.lt.s32.totalorder (!%p185_p8), %s767_s20, 1  ;;  %vm243_vm0 = vcmask (!%p185_p8), 253952   ;;  %s778_s28 = smov (!%p185_p8), 125   ;;  %v785_v4 = vmov (!%p185_p8), 0.0|0.0   ;;  %vm786_vm1 = vmmov (!%p185_p8), 0   ;;  %v787_v5 = vmov (!%p185_p8), 0.0  }
  0x16   : > { %188 = sbr.rel (%p185_p8) target bundleno = 999 (0x3e7), region = 32  ;;  %s779_s29 = smov (!%p185_p8), 127   ;;  %696 = vmatprep.subr.bf16.mxu0 (!%p185_p8), %v785_v4  ;;  %693 = vmatprep.mubr.msk.f32.mxu0 (!%p185_p8), %vm786_vm1, %v787_v5  ;;  %v788_v6 = vmov (!%p185_p8), 0   ;;  %v391_v7 = vld [vmem:[%s895_s3] sm:$0xff] (!%p185_p8)  ;;  %vm397_vm2 = vcmask (!%p185_p8), 130048   ;;  %vm478_vm4 = vcmask (!%p185_p8), 277520  }
  0x17   : > { %s780_s30 = smov (!%p185_p8), 124   ;;  %s781_s5 = smov (!%p185_p8), 126   ;;  %738 = vset.pattern.permute.xlu0 (!%p185_p8), %v788_v6  ;;  %v388_v25 = vld [vmem:[%s894_s2] sm:$0xff] (!%p185_p8)  ;;  %vm483_vm5 = vcmask (!%p185_p8), 7168   ;;  %vm488_vm6 = vcmask (!%p185_p8), 285968   ;;  %vm490_vm7 = vcmask (!%p185_p8), 15368  }
  0x18   : > { %s782_s6 = smov (!%p185_p8), 122   ;;  %s783_s7 = smov (!%p185_p8), 123   ;;  %vm495_vm8 = vcmask (!%p185_p8), 294168   ;;  %vm535_vm13 = vcmask (!%p185_p8), 261120  }
  0x19   : > { %s784_s8 = smov (!%p185_p8), 121   ;;  %s789_s13 = smov (!%p185_p8), 4  }
  0x1a   : > { %s790_s14 = smov (!%p185_p8), 2   ;;  %s791_s15 = smov (!%p185_p8), 6  }
  0x1b   : > { %s497_s16 = sld [smem:[#allocation5 + %s767_s20]] (!%p185_p8) }
  0x1d   : > { %s842_s23 = scalar_select %p220_p9, %s767_s20, 1 }
  0x1f   : > { %s659_s24 = sshll.u32 %s842_s23, 1 }
  0x20   : > { %s223_s27 = scalar_lea.vmem %s893_s1, %s659_s24  ;;  %s660_s24 = sshll.u32 %s842_s23, 3 }
  0x21   : > { %v663_v0 = vld [vmem:[%s223_s27] ss:$0 sm:$0xff]  ;;  %v670_v2 = vld [vmem:[%s223_s27 + $0x1] ss:$0 sm:$0xff]  ;;  %p499_p10 = scmp.eq.s32.totalorder %s497_s16, 4294967294  ;;  %p508_p11 = scmp.eq.s32.totalorder %s497_s16, 4294967295 }
  0x22   : > { %v242_v1 = vld [vmem:[%s223_s27] sm:$0x1]  ;;  %271 = vrot.lane.b32.xlu1 %v663_v0, %s778_s28  ;;  %251 = vrot.lane.b32.xlu0 %v663_v0, %s779_s29  ;;  %v668_v3 = vld [vmem:[%s223_s27 + $0x1] sm:$0x1]  ;;  %p517_p12 = scmp.eq.s32.totalorder %s497_s16, 1  ;;  %p526_p13 = scmp.eq.s32.totalorder %s497_s16, 2 }
  0x23   : > { %244 = vst.msk [vmem:[#allocation2] sm:$0x1] %vm243_vm0, %v242_v1  ;;  %317 = vst.msk [vmem:[#allocation2 + $0x8] sm:$0x1] %vm243_vm0, %v668_v3  ;;  %s500_s17 = scalar_select %p499_p10, 1, 0 }
  0x24   : > { %s509_s18 = scalar_select %p508_p11, 1, 0 }
  0x25   : > { %v501_v37 = vstv %s500_s17  ;;  %s518_s19 = scalar_select %p517_p12, 1, 0 }
  0x26   : > { %281 = vrot.lane.b32.xlu1 %v663_v0, %s780_s30  ;;  %261 = vrot.lane.b32.xlu0 %v663_v0, %s781_s5  ;;  %vm502_vm9 = vcmp.eq.s32.totalorder %v501_v37, 1  ;;  %v510_v40 = vstv %s509_s18  ;;  %s527_s20 = scalar_select %p526_p13, 1, 0 }
  0x27   : > { %vm511_vm10 = vcmp.eq.s32.totalorder %v510_v40, 1  ;;  %v519_v43 = vstv %s518_s19  ;;  %s241_s27 = scalar_lea.vmem %s896_s4, %s660_s24 }
  0x28   : > { %vm520_vm11 = vcmp.eq.s32.totalorder %v519_v43, 1  ;;  %v528_v46 = vstv %s527_s20 }
  0x29   : > { %vm529_vm12 = vcmp.eq.s32.totalorder %v528_v46, 1 }
  0x2a   : > { %301 = vrot.lane.b32.xlu1 %v663_v0, %s782_s6  ;;  %291 = vrot.lane.b32.xlu0 %v663_v0, %s783_s7 }
  0x2e   : > { %324 = vrot.lane.b32.xlu1 %v670_v2, %s779_s29  ;;  %311 = vrot.lane.b32.xlu0 %v663_v0, %s784_s8 }
  0x32   : > { %344 = vrot.lane.b32.xlu1 %v670_v2, %s778_s28  ;;  %334 = vrot.lane.b32.xlu0 %v670_v2, %s781_s5 }
  0x36   : > { %364 = vrot.lane.b32.xlu1 %v670_v2, %s783_s7  ;;  %354 = vrot.lane.b32.xlu0 %v670_v2, %s780_s30 }
  0x3a   : > { %384 = vrot.lane.b32.xlu1 %v670_v2, %s784_s8  ;;  %374 = vrot.lane.b32.xlu0 %v670_v2, %s782_s6 }
  0x3e   : > { %394 = vperm.xlu0 %738, %v391_v7  }
  0x94   : > { %v272_v8 = vpop.permute.xlu1 %271  ;;  %v252_v9 = vpop.permute.xlu0 %251 }
  0x95   : > { %274 = vst.msk [vmem:[#allocation2 + $0x3] sm:$0x1] %vm243_vm0, %v272_v8  ;;  %254 = vst.msk [vmem:[#allocation2 + $0x1] sm:$0x1] %vm243_vm0, %v252_v9 }
  0x98   : > { %v282_v10 = vpop.permute.xlu1 %281  ;;  %v262_v11 = vpop.permute.xlu0 %261 }
  0x99   : > { %284 = vst.msk [vmem:[#allocation2 + $0x4] sm:$0x1] %vm243_vm0, %v282_v10  ;;  %264 = vst.msk [vmem:[#allocation2 + $0x2] sm:$0x1] %vm243_vm0, %v262_v11 }
  0x9c   : > { %v302_v12 = vpop.permute.xlu1 %301  ;;  %v292_v13 = vpop.permute.xlu0 %291 }
  0x9d   : > { %304 = vst.msk [vmem:[#allocation2 + $0x6] sm:$0x1] %vm243_vm0, %v302_v12  ;;  %294 = vst.msk [vmem:[#allocation2 + $0x5] sm:$0x1] %vm243_vm0, %v292_v13 }
  0xa0   : > { %v325_v14 = vpop.permute.xlu1 %324  ;;  %v312_v15 = vpop.permute.xlu0 %311 }
  0xa1   : > { %327 = vst.msk [vmem:[#allocation2 + $0x9] sm:$0x1] %vm243_vm0, %v325_v14  ;;  %314 = vst.msk [vmem:[#allocation2 + $0x7] sm:$0x1] %vm243_vm0, %v312_v15 }
  0xa4   : > { %v345_v16 = vpop.permute.xlu1 %344  ;;  %v335_v17 = vpop.permute.xlu0 %334 }
  0xa5   : > { %347 = vst.msk [vmem:[#allocation2 + $0xb] sm:$0x1] %vm243_vm0, %v345_v16  ;;  %337 = vst.msk [vmem:[#allocation2 + $0xa] sm:$0x1] %vm243_vm0, %v335_v17 }
  0xa8   : > { %v365_v18 = vpop.permute.xlu1 %364  ;;  %v355_v19 = vpop.permute.xlu0 %354  ;;  %v389_v22 = vld [vmem:[#allocation2] sm:$0xff] }
  0xa9   : > { %367 = vst.msk [vmem:[#allocation2 + $0xd] sm:$0x1] %vm243_vm0, %v365_v18  ;;  %357 = vst.msk [vmem:[#allocation2 + $0xc] sm:$0x1] %vm243_vm0, %v355_v19 }
  0xac   : > { %v385_v20 = vpop.permute.xlu1 %384  ;;  %v375_v21 = vpop.permute.xlu0 %374 }
  0xad   : > { %387 = vst.msk [vmem:[#allocation2 + $0xf] sm:$0x1] %vm243_vm0, %v385_v20  ;;  %377 = vst.msk [vmem:[#allocation2 + $0xe] sm:$0x1] %vm243_vm0, %v375_v21 }
  0xb4   : > { %v390_v23 = vld [vmem:[#allocation2 + $0x8] sm:$0xff] }
  0xb5   : > { %v697_v24 = vpack.c.bf16 %v390_v23, %v389_v22 }
  0xb7   : > { %698 = vmatpush3.bf16.msra.mxu0 %v697_v24 }
  0xba   : > { %694 = vmatmul.mubr.msk.f32.vlgmr.msra.gmra.mrb[0].mxu0 %vm397_vm2, %v388_v25 }
  0xbd   : > { %v395_v26 = vpop.permute.xlu0 %394 }
 0x18d   : > { %v467_v27 = vpop.f32.mrb[0].mxu0 }
 0x18e   : > { %v468_v28 = vadd.f32 %v467_v27, %v395_v26  ;;  %v695_v29 = vpop.f32.mrb[1].mxu0 }
 0x190   : > { %vm471_vm3 = vcmp.ge.f32.partialorder %v468_v28, 0.0  ;;  %v472_v30 = vmul.f32 0.2, %v468_v28 }
 0x192   : > { %v473_v31 = vsel %vm471_vm3, %v468_v28, %v472_v30 }
 0x193   : > { %485 = vrot.lane.b32.xlu0 %v473_v31, %s789_s13  ;;  %475 = vrot.lane.b32.xlu1 %v473_v31, %s790_s14 }
 0x197   : > { %480 = vrot.lane.b32.xlu1 %v473_v31, %s781_s5 }
 0x19b   : > { %492 = vrot.lane.b32.xlu1 %v473_v31, %s791_s15 }
 0x205   : > { %v476_v32 = vpop.permute.xlu1 %475  ;;  %v486_v34 = vpop.permute.xlu0 %485 }
 0x206   : > { %479 = vst.msk [vmem:[#allocation3] sm:$0xff] %vm478_vm4, %v476_v32 }
 0x209   : > { %v481_v33 = vpop.permute.xlu1 %480 }
 0x20a   : > { %484 = vst.msk [vmem:[#allocation3] sm:$0xff] %vm483_vm5, %v481_v33 }
 0x20b   : > { %489 = vst.msk [vmem:[#allocation3] sm:$0xff] %vm488_vm6, %v486_v34 }
 0x20c   : > { %491 = vst.msk [vmem:[#allocation3] sm:$0xff] %vm490_vm7, %v473_v31 }
 0x20d   : > { %v493_v35 = vpop.permute.xlu1 %492 }
 0x20e   : > { %496 = vst.msk [vmem:[#allocation3] sm:$0xff] %vm495_vm8, %v493_v35 }
 0x215   : > { %v498_v36 = vld [vmem:[#allocation3] sm:$0xff] }
 0x216   : > { %504 = vrot.lane.b32.xlu0 %v498_v36, %s790_s14 }
 0x288   : > { %v505_v38 = vpop.permute.xlu0 %504 }
 0x289   : > { %v507_v39 = vsel %vm502_vm9, %v498_v36, %v505_v38 }
 0x28a   : > { %513 = vrot.lane.b32.xlu1 %v507_v39, %s779_s29 }
 0x2fc   : > { %v514_v41 = vpop.permute.xlu1 %513 }
 0x2fd   : > { %v516_v42 = vsel %vm511_vm10, %v498_v36, %v514_v41 }
 0x2fe   : > { %522 = vrot.lane.b32.xlu0 %v516_v42, %s781_s5 }
 0x370   : > { %v523_v44 = vpop.permute.xlu0 %522 }
 0x371   : > { %v525_v45 = vsel %vm520_vm11, %v498_v36, %v523_v44 }
 0x372   : > { %531 = vrot.lane.b32.xlu1 %v525_v45, %s779_s29 }
 0x3e4   : > { %v532_v47 = vpop.permute.xlu1 %531 }
 0x3e5   : > { %v534_v48 = vsel %vm529_vm12, %v498_v36, %v532_v47 }
 0x3e6   : > { %536 = vst.msk [vmem:[%s241_s27] sm:$0xff] %vm535_vm13, %v534_v48 }
 0x3e7 PF: > { %s20_s22 = sadd.s32 1, %s775_s22   ;;  %s897_s20 = smov %s771_s21 }
 0x3e8   : > { %p17_p0 = scmp.ge.s32.totalorder %s20_s22, 4   ;;  %s898_s21 = smov %s900_s0 }
 0x3ea   :  { %19 = sbr.rel (!%p17_p0) target bundleno = 17 (0x11), region = 69 }

// kernel: wavegan_discriminator_fwd.7
= control target key start
LH: loop header
LB: loop body
LE: loop exit
PB: predicated region body
PF: predicated region fallthrough
CT: control target
= control target key end

     0   :  { %vm36_vm0 = vcmask 64512   ;;  %v69_v29 = vlaneseq  ;;  %vm80_vm1 = vcmask 130112   ;;  %vm87_vm2 = vcmask 195712   ;;  %s207_s0 = inlined_call_operand.vmem [shape: f32[2,32,8], index: 0, kind: input, shape index: {}]   ;;  %s208_s1 = inlined_call_operand.vmem [shape: f32[32,8], index: 1, kind: input, shape index: {}]   ;;  %s209_s2 = inlined_call_operand.<no memory space> [shape: f32[1,1], index: 2, kind: input, shape index: {}]   ;;  %s210_s3 = inlined_call_operand.vmem [shape: f32[2,1], index: 3, kind: output, shape index: {}]  }
   0x1   :  { %v20_v0 = vld [vmem:[%s207_s0 + $0x20] sm:$0xff]  ;;  %v21_v5 = vld [vmem:[%s207_s0 + $0x28] sm:$0xff]  ;;  %v22_v10 = vld [vmem:[%s207_s0 + $0x30] sm:$0xff]  ;;  %v8_v28 = vstv %s209_s2  ;;  %vm94_vm3 = vcmask 261312   ;;  %vm115_vm4 = vcmask 1041409   ;;  %vm118_vm5 = vcmask 254976  }
   0x2   :  { %v24_v1 = vld [vmem:[%s208_s1] sm:$0xff]  ;;  %v25_v6 = vld [vmem:[%s208_s1 + $0x8] sm:$0xff]  ;;  %v26_v11 = vld [vmem:[%s208_s1 + $0x10] sm:$0xff]  ;;  %9 = vst [vmem:[#allocation2] sm:$0x1] %v8_v28  ;;  %v70_v30 = vand.u32 127, %v69_v29 }
   0x3   :  { %v16_v2 = vld [vmem:[%s207_s0] sm:$0xff]  ;;  %v32_v3 = vmul.f32 %v24_v1, %v20_v0  ;;  %v17_v7 = vld [vmem:[%s207_s0 + $0x8] sm:$0xff]  ;;  %v33_v8 = vmul.f32 %v25_v6, %v21_v5  ;;  %v18_v12 = vld [vmem:[%s207_s0 + $0x10] sm:$0xff]  ;;  %v34_v17 = vmul.f32 %v26_v11, %v22_v10  ;;  %v72_v35 = vshrl.u32 %v69_v29, 7 }
   0x4   :  { %v28_v4 = vmul.f32 %v24_v1, %v16_v2  ;;  %v29_v9 = vmul.f32 %v25_v6, %v17_v7  ;;  %v30_v18 = vmul.f32 %v26_v11, %v18_v12  ;;  %v23_v19 = vld [vmem:[%s207_s0 + $0x38] sm:$0xff]  ;;  %v75_v33 = vadd.s32 4294967288, %v70_v30 }
   0x5   :  { %v49_v13 = vsel %vm36_vm0, %v32_v3, 0.0  ;;  %v52_v15 = vsel %vm36_vm0, %v33_v8, 0.0  ;;  %v27_v20 = vld [vmem:[%s208_s1 + $0x18] sm:$0xff]  ;;  %v55_v22 = vsel %vm36_vm0, %v34_v17, 0.0  ;;  %v82_v34 = vadd.s32 4294967280, %v70_v30 }
   0x6   :  { %v37_v14 = vsel %vm36_vm0, %v28_v4, 0.0  ;;  %50 = vadd.xlane.f32.xlu1 %v49_v13  ;;  %v40_v16 = vsel %vm36_vm0, %v29_v9, 0.0  ;;  %v19_v21 = vld [vmem:[%s207_s0 + $0x18] sm:$0xff]  ;;  %v43_v23 = vsel %vm36_vm0, %v30_v18, 0.0  ;;  %v35_v24 = vmul.f32 %v27_v20, %v23_v19 }
   0x7   :  { %38 = vadd.xlane.f32.xlu0 %v37_v14  ;;  %v31_v25 = vmul.f32 %v27_v20, %v19_v21  ;;  %v78_v38 = vsub.s32 %v75_v33, %v72_v35  ;;  %v89_v39 = vadd.s32 4294967272, %v70_v30  ;;  %v85_v40 = vsub.s32 %v82_v34, %v72_v35 }
   0x8   :  { %v58_v26 = vsel %vm36_vm0, %v35_v24, 0.0  ;;  %v73_v41 = vsub.s32 %v70_v30, %v72_v35  ;;  %vm130_vm6 = vcmask 1024  }
   0x9   :  { %v46_v27 = vsel %vm36_vm0, %v31_v25, 0.0  ;;  %v92_v46 = vsub.s32 %v89_v39, %v72_v35  ;;  %v136_v63 = vld [vmem:[#allocation2] ss:$0 sm:$0xff] }
   0xa   :  { %53 = vadd.xlane.f32.xlu1 %v52_v15 }
   0xb   :  { %41 = vadd.xlane.f32.xlu0 %v40_v16 }
   0xe   :  { %56 = vadd.xlane.f32.xlu1 %v55_v22 }
   0xf   :  { %44 = vadd.xlane.f32.xlu0 %v43_v23 }
  0x12   :  { %59 = vadd.xlane.f32.xlu1 %v58_v26 }
  0x13   :  { %47 = vadd.xlane.f32.xlu0 %v46_v27 }
  0x93   :  { %v51_v31 = vpop.xlane.xlu1 %50 }
  0x94   :  { %v39_v32 = vpop.xlane.xlu0 %38  ;;  %v99_v49 = vrot.slane %v51_v31, %v73_v41 }
  0x95   :  { %v74_v50 = vrot.slane %v39_v32, %v73_v41 }
  0x97   :  { %v54_v36 = vpop.xlane.xlu1 %53 }
  0x98   :  { %v42_v37 = vpop.xlane.xlu0 %41  ;;  %v103_v44 = vrot.slane %v54_v36, %v78_v38 }
  0x99   :  { %v79_v45 = vrot.slane %v42_v37, %v78_v38 }
  0x9a   :  { %v104_v53 = vsel %vm80_vm1, %v103_v44, %v99_v49 }
  0x9b   :  { %v57_v42 = vpop.xlane.xlu1 %56  ;;  %v81_v54 = vsel %vm80_vm1, %v79_v45, %v74_v50 }
  0x9c   :  { %v45_v43 = vpop.xlane.xlu0 %44  ;;  %v108_v47 = vrot.slane %v57_v42, %v85_v40 }
  0x9d   :  { %v86_v48 = vrot.slane %v45_v43, %v85_v40 }
  0x9e   :  { %v109_v57 = vsel %vm87_vm2, %v108_v47, %v104_v53 }
  0x9f   :  { %v60_v51 = vpop.xlane.xlu1 %59  ;;  %v88_v58 = vsel %vm87_vm2, %v86_v48, %v81_v54 }
  0xa0   :  { %v48_v52 = vpop.xlane.xlu0 %47  ;;  %v113_v55 = vrot.slane %v60_v51, %v92_v46 }
  0xa1   :  { %v93_v56 = vrot.slane %v48_v52, %v92_v46 }
  0xa2   :  { %v114_v60 = vsel %vm94_vm3, %v113_v55, %v109_v57 }
  0xa3   :  { %v95_v59 = vsel %vm94_vm3, %v93_v56, %v88_v58 }
  0xa4   :  { %v116_v61 = vsel %vm115_vm4, %v114_v60, %v95_v59 }
  0xa5   :  { %v119_v62 = vsel %vm118_vm5, %v116_v61, 0.0 }
  0xa6   :  { %120 = vadd.xlane.f32.xlu0 %v119_v62 }
 0x133   :  { %v121_v0 = vpop.xlane.xlu0 %120 }
 0x134   :  { %v129_v1 = vadd.f32 %v136_v63, %v121_v0 }
 0x136   :  { %131 = vst.msk [vmem:[%s210_s3] sm:$0x3] %vm130_vm6, %v129_v1 }

// kernel: wavegan_discriminator_fwd.6
= control target key start
LH: loop header
LB: loop body
LE: loop exit
PB: predicated region body
PF: predicated region fallthrough
CT: control target
= control target key end

     0   :  { %s1338_s0 = inlined_call_operand.vmem [shape: s32[2], index: 0, kind: input, shape index: {}]   ;;  %s1339_s1 = inlined_call_operand.vmem [shape: f32[2,2,16,15], index: 1, kind: input, shape index: {}]   ;;  %s1340_s2 = inlined_call_operand.vmem [shape: f32[32,256], index: 2, kind: input, shape index: {}]   ;;  %s1341_s3 = inlined_call_operand.vmem [shape: f32[32,1], index: 3, kind: input, shape index: {}]   ;;  %s1342_s4 = inlined_call_operand.vmem [shape: f32[2,32,8], index: 4, kind: output, shape index: {}]  }
   0x1   :  { %s9_s17 = sshll.u32 %s1338_s0, 4  ;;  %s10_s17 = int_to_ptr.vmem [resolvable:$true] %s9_s17 }
   0x2   :  { %s1069_s18 = scalar_lea.vmem %s10_s17, 16  ;;  %p1074_p1 = scmp.lt.s32.totalorder %s10_s17, %s10_s17 }
   0x3   :  { %p1070_p0 = scmp.ne.s32.totalorder %s10_s17, %s1069_s18  ;;  %p1075_p2 = scmp.lt.s32.totalorder %s1069_s18, %s1069_s18 }
   0x5   :  { %p1076_p3 = por %p1075_p2, %p1074_p1 }
   0x7   :  { %p1077_p4 = pnand %p1076_p3, %p1070_p0 }
   0x9   :  { %1080 = shalt.err (!%p1077_p4)  }
   0xa   :  { %s1107_s19 = smov [#allocation5]  }
   0xb   :  { %12 = dma.vmem_to_smem %s10_s17, 16, %s1107_s19, [#allocation4] }
   0xc   :  { %1093 = dma.done.wait [#allocation4], 16 }
   0xd   :  { %1094 = vsyncadd [#allocation4], 4294967280 }
   0xe   :  { %14 = sfence }
   0xf   :  { %s1147_s20 = smov 0   ;;  %s1149_s21 = smov 0  }
  0x10   :  { %s1151_s22 = smov 0  }
  0x11 LB: > { %s39_s0 = sadd.s32 1, %s1101_s21  ;;  %p914_p5 = scmp.ge.s32.totalorder %s1105_s22, 1  ;;  %s1105_s22 = sphi %s1151_s22, %s20_s22   ;;  %s1101_s21 = sphi %s1149_s21, %s1344_s21   ;;  %s1097_s20 = sphi %s1147_s20, %s1343_s20  }
  0x12   : > { %p41_p6 = scmp.ge.s32.totalorder %s39_s0, 2  ;;  %p190_p7 = scmp.lt.s32.totalorder %s1105_s22, 3 }
  0x14   : > { %s1346_s0 = smov (%p41_p6, %s39_s0), 0  ;;  %p191_p8 = pnand %p914_p5, %p190_p7 }
  0x15   : > { %p232_p9 = scmp.lt.s32.totalorder (!%p191_p8), %s1097_s20, 1  ;;  %vm265_vm0 = vcmask (!%p191_p8), 64512   ;;  %s1108_s28 = smov (!%p191_p8), 127   ;;  %v442_v10 = vld [vmem:[%s1340_s2 + $0x8] sm:$0xff] (!%p191_p8)  ;;  %v481_v13 = vld [vmem:[%s1341_s3] sm:$0xff] (!%p191_p8)  ;;  %v1115_v14 = vmov (!%p191_p8), 0  }
  0x16   : > { %194 = sbr.rel (%p191_p8) target bundleno = 1054 (0x41e), region = 32  ;;  %s1109_s29 = smov (!%p191_p8), 126   ;;  %v446_v11 = vld [vmem:[%s1340_s2 + $0x28] sm:$0xff] (!%p191_p8)  ;;  %569 = vmatprep.mubr.f32.mxu0 (!%p191_p8), %v442_v10  ;;  %1068 = vset.pattern.permute.xlu1 (!%p191_p8), %v1115_v14  ;;  %v483_v15 = vld [vmem:[%s1341_s3 + $0x10] sm:$0xff] (!%p191_p8)  ;;  %v484_v16 = vld [vmem:[%s1341_s3 + $0x18] sm:$0xff] (!%p191_p8)  ;;  %vm618_vm5 = vcmask (!%p191_p8), 80912  }
  0x17   : > { %s1110_s30 = smov (!%p191_p8), 125   ;;  %s1111_s5 = smov (!%p191_p8), 124   ;;  %579 = vmatprep.mubr.f32.mxu1 (!%p191_p8), %v446_v11  ;;  %v482_v12 = vld [vmem:[%s1341_s3 + $0x8] sm:$0xff] (!%p191_p8)  ;;  %1067 = vset.pattern.permute.xlu0 (!%p191_p8), %v1115_v14  ;;  %vm635_vm6 = vcmask (!%p191_p8), 7168   ;;  %vm652_vm7 = vcmask (!%p191_p8), 89168   ;;  %vm657_vm8 = vcmask (!%p191_p8), 15368  }
  0x18   : > { %s1112_s6 = smov (!%p191_p8), 123   ;;  %s1113_s7 = smov (!%p191_p8), 122   ;;  %vm674_vm9 = vcmask (!%p191_p8), 97368  }
  0x19   : > { %s1114_s8 = smov (!%p191_p8), 121   ;;  %s1116_s14 = smov (!%p191_p8), 2  }
  0x1a   : > { %s1117_s15 = smov (!%p191_p8), 4   ;;  %s1118_s16 = smov (!%p191_p8), 6  }
  0x1b   : > { %s1286_s17 = sld [smem:[#allocation5 + %s1097_s20]] (!%p191_p8) }
  0x1d   : > { %s1169_s23 = scalar_select %p232_p9, %s1097_s20, 1 }
  0x1f   : > { %s937_s24 = sshll.u32 %s1169_s23, 5 }
  0x20   : > { %s236_s27 = scalar_lea.vmem %s1339_s1, %s937_s24 }
  0x21   : > { %v921_v0 = vld [vmem:[%s236_s27 + $0x10] sm:$0xff]  ;;  %v268_v1 = vld [vmem:[%s236_s27] sm:$0xff]  ;;  %v922_v2 = vld [vmem:[%s236_s27 + $0x18] sm:$0xff]  ;;  %p684_p10 = scmp.eq.s32.totalorder %s1286_s17, 4294967294  ;;  %p708_p11 = scmp.eq.s32.totalorder %s1286_s17, 4294967295 }
  0x22   : > { %361 = vrot.lane.b32.xlu0 %v921_v0, %s1108_s28  ;;  %272 = vrot.lane.b32.xlu1 %v268_v1, %s1108_s28  ;;  %v269_v3 = vld [vmem:[%s236_s27 + $0x8] sm:$0xff]  ;;  %355 = vst.msk [vmem:[#allocation2 + $0x80] sm:$0xff] %vm265_vm0, %v921_v0  ;;  %356 = vst.msk [vmem:[#allocation2 + $0x88] sm:$0xff] %vm265_vm0, %v922_v2  ;;  %p732_p12 = scmp.eq.s32.totalorder %s1286_s17, 1  ;;  %p756_p13 = scmp.eq.s32.totalorder %s1286_s17, 2 }
  0x23   : > { %266 = vst.msk [vmem:[#allocation2] sm:$0xff] %vm265_vm0, %v268_v1  ;;  %267 = vst.msk [vmem:[#allocation2 + $0x8] sm:$0xff] %vm265_vm0, %v269_v3  ;;  %s685_s18 = scalar_select %p684_p10, 1, 0 }
  0x24   : > { %s709_s20 = scalar_select %p708_p11, 1, 0 }
  0x25   : > { %s733_s19 = scalar_select %p732_p12, 1, 0 }
  0x26   : > { %363 = vrot.lane.b32.xlu0 %v922_v2, %s1108_s28  ;;  %274 = vrot.lane.b32.xlu1 %v269_v3, %s1108_s28  ;;  %s261_s27 = scalar_lea.vmem %s1342_s4, %s937_s24 }
  0x29   : > { %v465_v4 = vld [vmem:[#allocation2 + $0x80] sm:$0xff]  ;;  %v466_v5 = vld [vmem:[#allocation2 + $0x88] sm:$0xff] }
  0x2a   : > { %v449_v6 = vld [vmem:[#allocation2] sm:$0xff]  ;;  %373 = vrot.lane.b32.xlu0 %v921_v0, %s1109_s29  ;;  %375 = vrot.lane.b32.xlu1 %v922_v2, %s1109_s29  ;;  %v983_v7 = vpack.c.bf16 %v466_v5, %v465_v4  ;;  %v450_v8 = vld [vmem:[#allocation2 + $0x8] sm:$0xff] }
  0x2b   : > { %v985_v9 = vpack.c.bf16 %v450_v8, %v449_v6 }
  0x2c   : > { %984 = vmatprep.subr.bf16.mxu0 %v983_v7  ;;  %1015 = vmatprep.subr.bf16.mxu1 %v983_v7 }
  0x2d   : > { %986 = vmatpush3.bf16.msra.mxu0 %v985_v9  ;;  %1023 = vmatpush3.bf16.msra.mxu1 %v985_v9 }
  0x2e   : > { %284 = vrot.lane.b32.xlu0 %v268_v1, %s1109_s29  ;;  %286 = vrot.lane.b32.xlu1 %v269_v3, %s1109_s29 }
  0x32   : > { %385 = vrot.lane.b32.xlu0 %v921_v0, %s1110_s30  ;;  %387 = vrot.lane.b32.xlu1 %v922_v2, %s1110_s30 }
  0x36   : > { %296 = vrot.lane.b32.xlu0 %v268_v1, %s1110_s30  ;;  %298 = vrot.lane.b32.xlu1 %v269_v3, %s1110_s30 }
  0x3a   : > { %397 = vrot.lane.b32.xlu0 %v921_v0, %s1111_s5  ;;  %399 = vrot.lane.b32.xlu1 %v922_v2, %s1111_s5 }
  0x3e   : > { %308 = vrot.lane.b32.xlu0 %v268_v1, %s1111_s5  ;;  %310 = vrot.lane.b32.xlu1 %v269_v3, %s1111_s5 }
  0x42   : > { %409 = vrot.lane.b32.xlu0 %v921_v0, %s1112_s6  ;;  %411 = vrot.lane.b32.xlu1 %v922_v2, %s1112_s6 }
  0x46   : > { %320 = vrot.lane.b32.xlu0 %v268_v1, %s1112_s6  ;;  %322 = vrot.lane.b32.xlu1 %v269_v3, %s1112_s6 }
  0x4a   : > { %421 = vrot.lane.b32.xlu0 %v921_v0, %s1113_s7  ;;  %423 = vrot.lane.b32.xlu1 %v922_v2, %s1113_s7 }
  0x4e   : > { %332 = vrot.lane.b32.xlu0 %v268_v1, %s1113_s7  ;;  %334 = vrot.lane.b32.xlu1 %v269_v3, %s1113_s7 }
  0x52   : > { %433 = vrot.lane.b32.xlu0 %v921_v0, %s1114_s8  ;;  %435 = vrot.lane.b32.xlu1 %v922_v2, %s1114_s8 }
  0x56   : > { %344 = vrot.lane.b32.xlu0 %v268_v1, %s1114_s8  ;;  %346 = vrot.lane.b32.xlu1 %v269_v3, %s1114_s8 }
  0x5a   : > { %492 = vperm.xlu1 %1068, %v482_v12   ;;  %487 = vperm.xlu0 %1067, %v481_v13  }
  0x5e   : > { %497 = vperm.xlu1 %1068, %v483_v15   ;;  %502 = vperm.xlu0 %1067, %v484_v16  }
  0x94   : > { %v362_v17 = vpop.permute.xlu0 %361  ;;  %v273_v18 = vpop.permute.xlu1 %272 }
  0x95   : > { %367 = vst.msk [vmem:[#allocation2 + $0x90] sm:$0xff] %vm265_vm0, %v362_v17  ;;  %278 = vst.msk [vmem:[#allocation2 + $0x10] sm:$0xff] %vm265_vm0, %v273_v18 }
  0x98   : > { %v364_v19 = vpop.permute.xlu0 %363  ;;  %v275_v20 = vpop.permute.xlu1 %274 }
  0x99   : > { %368 = vst.msk [vmem:[#allocation2 + $0x98] sm:$0xff] %vm265_vm0, %v364_v19  ;;  %279 = vst.msk [vmem:[#allocation2 + $0x18] sm:$0xff] %vm265_vm0, %v275_v20 }
  0x9c   : > { %v374_v21 = vpop.permute.xlu0 %373  ;;  %v376_v22 = vpop.permute.xlu1 %375  ;;  %v467_v23 = vld [vmem:[#allocation2 + $0x90] sm:$0xff] }
  0x9d   : > { %379 = vst.msk [vmem:[#allocation2 + $0xa0] sm:$0xff] %vm265_vm0, %v374_v21  ;;  %380 = vst.msk [vmem:[#allocation2 + $0xa8] sm:$0xff] %vm265_vm0, %v376_v22  ;;  %v451_v27 = vld [vmem:[#allocation2 + $0x10] sm:$0xff] }
  0xa0   : > { %v285_v24 = vpop.permute.xlu0 %284  ;;  %v287_v25 = vpop.permute.xlu1 %286  ;;  %v468_v26 = vld [vmem:[#allocation2 + $0x98] sm:$0xff] }
  0xa1   : > { %v452_v28 = vld [vmem:[#allocation2 + $0x18] sm:$0xff]  ;;  %290 = vst.msk [vmem:[#allocation2 + $0x20] sm:$0xff] %vm265_vm0, %v285_v24  ;;  %291 = vst.msk [vmem:[#allocation2 + $0x28] sm:$0xff] %vm265_vm0, %v287_v25  ;;  %v987_v29 = vpack.c.bf16 %v468_v26, %v467_v23  ;;  %v441_v23 = vld [vmem:[%s1340_s2] sm:$0xff] }
  0xa2   : > { %v989_v30 = vpack.c.bf16 %v452_v28, %v451_v27  ;;  %v445_v24 = vld [vmem:[%s1340_s2 + $0x20] sm:$0xff]  ;;  %v444_v25 = vld [vmem:[%s1340_s2 + $0x18] sm:$0xff]  ;;  %v443_v27 = vld [vmem:[%s1340_s2 + $0x10] sm:$0xff] }
  0xa3   : > { %988 = vmatprep.subr.bf16.mxu0 %v987_v29  ;;  %1016 = vmatprep.subr.bf16.mxu1 %v987_v29  ;;  %v448_v26 = vld [vmem:[%s1340_s2 + $0x38] sm:$0xff]  ;;  %v447_v28 = vld [vmem:[%s1340_s2 + $0x30] sm:$0xff] }
  0xa4   : > { %v386_v31 = vpop.permute.xlu0 %385  ;;  %v388_v32 = vpop.permute.xlu1 %387  ;;  %990 = vmatpush3.bf16.msra.mxu0 %v989_v30  ;;  %1024 = vmatpush3.bf16.msra.mxu1 %v989_v30  ;;  %v469_v33 = vld [vmem:[#allocation2 + $0xa0] sm:$0xff]  ;;  %v470_v34 = vld [vmem:[#allocation2 + $0xa8] sm:$0xff] }
  0xa5   : > { %391 = vst.msk [vmem:[#allocation2 + $0xb0] sm:$0xff] %vm265_vm0, %v386_v31  ;;  %392 = vst.msk [vmem:[#allocation2 + $0xb8] sm:$0xff] %vm265_vm0, %v388_v32  ;;  %v991_v35 = vpack.c.bf16 %v470_v34, %v469_v33 }
  0xa7   : > { %992 = vmatprep.subr.bf16.mxu0 %v991_v35  ;;  %1017 = vmatprep.subr.bf16.mxu1 %v991_v35 }
  0xa8   : > { %v297_v36 = vpop.permute.xlu0 %296  ;;  %v299_v37 = vpop.permute.xlu1 %298  ;;  %v453_v38 = vld [vmem:[#allocation2 + $0x20] sm:$0xff]  ;;  %v454_v39 = vld [vmem:[#allocation2 + $0x28] sm:$0xff] }
  0xa9   : > { %302 = vst.msk [vmem:[#allocation2 + $0x30] sm:$0xff] %vm265_vm0, %v297_v36  ;;  %303 = vst.msk [vmem:[#allocation2 + $0x38] sm:$0xff] %vm265_vm0, %v299_v37  ;;  %v993_v40 = vpack.c.bf16 %v454_v39, %v453_v38 }
  0xab   : > { %994 = vmatpush3.bf16.msra.mxu0 %v993_v40  ;;  %1025 = vmatpush3.bf16.msra.mxu1 %v993_v40 }
  0xac   : > { %v398_v41 = vpop.permute.xlu0 %397  ;;  %v400_v42 = vpop.permute.xlu1 %399  ;;  %v471_v43 = vld [vmem:[#allocation2 + $0xb0] sm:$0xff]  ;;  %v472_v44 = vld [vmem:[#allocation2 + $0xb8] sm:$0xff] }
  0xad   : > { %403 = vst.msk [vmem:[#allocation2 + $0xc0] sm:$0xff] %vm265_vm0, %v398_v41  ;;  %404 = vst.msk [vmem:[#allocation2 + $0xc8] sm:$0xff] %vm265_vm0, %v400_v42  ;;  %v995_v45 = vpack.c.bf16 %v472_v44, %v471_v43 }
  0xaf   : > { %996 = vmatprep.subr.bf16.mxu0 %v995_v45  ;;  %1018 = vmatprep.subr.bf16.mxu1 %v995_v45 }
  0xb0   : > { %v309_v46 = vpop.permute.xlu0 %308  ;;  %v311_v47 = vpop.permute.xlu1 %310  ;;  %v455_v48 = vld [vmem:[#allocation2 + $0x30] sm:$0xff]  ;;  %v456_v49 = vld [vmem:[#allocation2 + $0x38] sm:$0xff] }
  0xb1   : > { %314 = vst.msk [vmem:[#allocation2 + $0x40] sm:$0xff] %vm265_vm0, %v309_v46  ;;  %315 = vst.msk [vmem:[#allocation2 + $0x48] sm:$0xff] %vm265_vm0, %v311_v47  ;;  %v997_v50 = vpack.c.bf16 %v456_v49, %v455_v48 }
  0xb3   : > { %998 = vmatpush3.bf16.msra.mxu0 %v997_v50  ;;  %1026 = vmatpush3.bf16.msra.mxu1 %v997_v50 }
  0xb4   : > { %v410_v51 = vpop.permute.xlu0 %409  ;;  %v412_v52 = vpop.permute.xlu1 %411  ;;  %v473_v53 = vld [vmem:[#allocation2 + $0xc0] sm:$0xff]  ;;  %v474_v54 = vld [vmem:[#allocation2 + $0xc8] sm:$0xff] }
  0xb5   : > { %415 = vst.msk [vmem:[#allocation2 + $0xd0] sm:$0xff] %vm265_vm0, %v410_v51  ;;  %416 = vst.msk [vmem:[#allocation2 + $0xd8] sm:$0xff] %vm265_vm0, %v412_v52  ;;  %v999_v55 = vpack.c.bf16 %v474_v54, %v473_v53 }
  0xb7   : > { %1000 = vmatprep.subr.bf16.mxu0 %v999_v55  ;;  %1019 = vmatprep.subr.bf16.mxu1 %v999_v55 }
  0xb8   : > { %v321_v56 = vpop.permute.xlu0 %320  ;;  %v323_v57 = vpop.permute.xlu1 %322  ;;  %v457_v58 = vld [vmem:[#allocation2 + $0x40] sm:$0xff]  ;;  %v458_v59 = vld [vmem:[#allocation2 + $0x48] sm:$0xff] }
  0xb9   : > { %326 = vst.msk [vmem:[#allocation2 + $0x50] sm:$0xff] %vm265_vm0, %v321_v56  ;;  %327 = vst.msk [vmem:[#allocation2 + $0x58] sm:$0xff] %vm265_vm0, %v323_v57  ;;  %v1001_v60 = vpack.c.bf16 %v458_v59, %v457_v58 }
  0xbb   : > { %1002 = vmatpush3.bf16.msra.mxu0 %v1001_v60  ;;  %1027 = vmatpush3.bf16.msra.mxu1 %v1001_v60 }
  0xbc   : > { %v422_v61 = vpop.permute.xlu0 %421  ;;  %v424_v62 = vpop.permute.xlu1 %423  ;;  %v475_v63 = vld [vmem:[#allocation2 + $0xd0] sm:$0xff]  ;;  %v476_v0 = vld [vmem:[#allocation2 + $0xd8] sm:$0xff] }
  0xbd   : > { %427 = vst.msk [vmem:[#allocation2 + $0xe0] sm:$0xff] %vm265_vm0, %v422_v61  ;;  %428 = vst.msk [vmem:[#allocation2 + $0xe8] sm:$0xff] %vm265_vm0, %v424_v62  ;;  %v1003_v1 = vpack.c.bf16 %v476_v0, %v475_v63 }
  0xbf   : > { %1004 = vmatprep.subr.bf16.mxu0 %v1003_v1  ;;  %1020 = vmatprep.subr.bf16.mxu1 %v1003_v1 }
  0xc0   : > { %v333_v2 = vpop.permute.xlu0 %332  ;;  %v335_v3 = vpop.permute.xlu1 %334  ;;  %v459_v4 = vld [vmem:[#allocation2 + $0x50] sm:$0xff]  ;;  %v460_v5 = vld [vmem:[#allocation2 + $0x58] sm:$0xff] }
  0xc1   : > { %338 = vst.msk [vmem:[#allocation2 + $0x60] sm:$0xff] %vm265_vm0, %v333_v2  ;;  %339 = vst.msk [vmem:[#allocation2 + $0x68] sm:$0xff] %vm265_vm0, %v335_v3  ;;  %v1005_v6 = vpack.c.bf16 %v460_v5, %v459_v4 }
  0xc3   : > { %1006 = vmatpush3.bf16.msra.mxu0 %v1005_v6  ;;  %1028 = vmatpush3.bf16.msra.mxu1 %v1005_v6 }
  0xc4   : > { %v434_v7 = vpop.permute.xlu0 %433  ;;  %v436_v8 = vpop.permute.xlu1 %435  ;;  %v477_v9 = vld [vmem:[#allocation2 + $0xe0] sm:$0xff]  ;;  %v478_v10 = vld [vmem:[#allocation2 + $0xe8] sm:$0xff] }
  0xc5   : > { %439 = vst.msk [vmem:[#allocation2 + $0xf0] sm:$0xff] %vm265_vm0, %v434_v7  ;;  %440 = vst.msk [vmem:[#allocation2 + $0xf8] sm:$0xff] %vm265_vm0, %v436_v8  ;;  %v1007_v11 = vpack.c.bf16 %v478_v10, %v477_v9 }
  0xc7   : > { %1008 = vmatprep.subr.bf16.mxu0 %v1007_v11  ;;  %1021 = vmatprep.subr.bf16.mxu1 %v1007_v11 }
  0xc8   : > { %v345_v12 = vpop.permute.xlu0 %344  ;;  %v347_v13 = vpop.permute.xlu1 %346  ;;  %v461_v14 = vld [vmem:[#allocation2 + $0x60] sm:$0xff]  ;;  %v462_v15 = vld [vmem:[#allocation2 + $0x68] sm:$0xff] }
  0xc9   : > { %350 = vst.msk [vmem:[#allocation2 + $0x70] sm:$0xff] %vm265_vm0, %v345_v12  ;;  %351 = vst.msk [vmem:[#allocation2 + $0x78] sm:$0xff] %vm265_vm0, %v347_v13  ;;  %v1009_v16 = vpack.c.bf16 %v462_v15, %v461_v14  ;;  %v686_v13 = vstv %s685_s18 }
  0xca   : > { %vm687_vm10 = vcmp.eq.s32.totalorder %v686_v13, 1 }
  0xcb   : > { %1010 = vmatpush3.bf16.msra.mxu0 %v1009_v16  ;;  %1029 = vmatpush3.bf16.msra.mxu1 %v1009_v16 }
  0xcc   : > { %v479_v17 = vld [vmem:[#allocation2 + $0xf0] sm:$0xff]  ;;  %v480_v18 = vld [vmem:[#allocation2 + $0xf8] sm:$0xff] }
  0xcd   : > { %v1011_v19 = vpack.c.bf16 %v480_v18, %v479_v17 }
  0xcf   : > { %1012 = vmatprep.subr.bf16.mxu0 %v1011_v19  ;;  %1022 = vmatprep.subr.bf16.mxu1 %v1011_v19 }
  0xd0   : > { %v463_v20 = vld [vmem:[#allocation2 + $0x70] sm:$0xff]  ;;  %v464_v21 = vld [vmem:[#allocation2 + $0x78] sm:$0xff] }
  0xd1   : > { %v1013_v22 = vpack.c.bf16 %v464_v21, %v463_v20 }
  0xd3   : > { %1014 = vmatpush3.bf16.msra.mxu0 %v1013_v22  ;;  %1030 = vmatpush3.bf16.msra.mxu1 %v1013_v22  ;;  %v710_v22 = vstv %s709_s20 }
  0xd4   : > { %vm711_vm11 = vcmp.eq.s32.totalorder %v710_v22, 1 }
  0xd6   : > { %570 = vmatmul.mubr.f32.vlgmr.msra.gmra.mrb[0].mxu0 %v441_v23  ;;  %580 = vmatmul.mubr.f32.vlgmr.msra.gmra.mrb[0].mxu1 %v445_v24 }
  0xd7   : > { %574 = vmatprep.mubr.f32.mxu0 %v444_v25  ;;  %584 = vmatprep.mubr.f32.mxu1 %v448_v26 }
  0xd9   : > { %v493_v29 = vpop.permute.xlu1 %492  ;;  %v488_v30 = vpop.permute.xlu0 %487 }
  0xda   : > { %575 = vmatmul.mubr.f32.gmra.mrb[2].mxu0 %v443_v27  ;;  %585 = vmatmul.mubr.f32.gmra.mrb[2].mxu1 %v447_v28 }
  0xdd   : > { %v498_v31 = vpop.permute.xlu1 %497  ;;  %v503_v45 = vpop.permute.xlu0 %502 }
 0x1a9   : > { %v971_v32 = vpop.f32.mrb[0].mxu0  ;;  %v977_v33 = vpop.f32.mrb[0].mxu1 }
 0x1aa   : > { %v972_v34 = vpop.f32.mrb[1].mxu0  ;;  %v978_v35 = vpop.f32.mrb[1].mxu1 }
 0x1ab   : > { %v973_v36 = vadd.f32 %v972_v34, %v971_v32  ;;  %v979_v37 = vadd.f32 %v978_v35, %v977_v33 }
 0x1ad   : > { %v572_v38 = vadd.f32 %v973_v36, %v488_v30  ;;  %v582_v39 = vadd.f32 %v979_v37, %v498_v31  ;;  %v974_v40 = vpop.f32.mrb[2].mxu0  ;;  %v980_v41 = vpop.f32.mrb[2].mxu1  ;;  %v734_v31 = vstv %s733_s19 }
 0x1ae   : > { %v975_v42 = vpop.f32.mrb[3].mxu0  ;;  %v981_v43 = vpop.f32.mrb[3].mxu1  ;;  %vm735_vm12 = vcmp.eq.s32.totalorder %v734_v31, 1 }
 0x1af   : > { %vm590_vm1 = vcmp.ge.f32.partialorder %v572_v38, 0.0  ;;  %v594_v44 = vmul.f32 0.2, %v572_v38  ;;  %v976_v46 = vadd.f32 %v975_v42, %v974_v40  ;;  %v982_v47 = vadd.f32 %v981_v43, %v980_v41 }
 0x1b0   : > { %v596_v49 = vmul.f32 0.2, %v582_v39  ;;  %vm592_vm2 = vcmp.ge.f32.partialorder %v582_v39, 0.0 }
 0x1b1   : > { %v598_v48 = vsel %vm590_vm1, %v572_v38, %v594_v44  ;;  %v577_v50 = vadd.f32 %v976_v46, %v493_v29  ;;  %v587_v51 = vadd.f32 %v982_v47, %v503_v45 }
 0x1b2   : > { %606 = vrot.lane.b32.xlu1 %v598_v48, %s1116_s14  ;;  %v600_v53 = vsel %vm592_vm2, %v582_v39, %v596_v49 }
 0x1b3   : > { %vm591_vm3 = vcmp.ge.f32.partialorder %v577_v50, 0.0  ;;  %v595_v52 = vmul.f32 0.2, %v577_v50  ;;  %v597_v54 = vmul.f32 0.2, %v587_v51  ;;  %vm593_vm4 = vcmp.ge.f32.partialorder %v587_v51, 0.0 }
 0x1b5   : > { %v599_v55 = vsel %vm591_vm3, %v577_v50, %v595_v52  ;;  %v601_v56 = vsel %vm593_vm4, %v587_v51, %v597_v54 }
 0x1b6   : > { %610 = vrot.lane.b32.xlu1 %v600_v53, %s1116_s14  ;;  %608 = vrot.lane.b32.xlu0 %v599_v55, %s1116_s14 }
 0x1ba   : > { %623 = vrot.lane.b32.xlu1 %v598_v48, %s1109_s29  ;;  %612 = vrot.lane.b32.xlu0 %v601_v56, %s1116_s14 }
 0x1be   : > { %627 = vrot.lane.b32.xlu1 %v600_v53, %s1109_s29  ;;  %625 = vrot.lane.b32.xlu0 %v599_v55, %s1109_s29 }
 0x1c2   : > { %640 = vrot.lane.b32.xlu1 %v598_v48, %s1117_s15  ;;  %629 = vrot.lane.b32.xlu0 %v601_v56, %s1109_s29 }
 0x1c6   : > { %644 = vrot.lane.b32.xlu1 %v600_v53, %s1117_s15  ;;  %642 = vrot.lane.b32.xlu0 %v599_v55, %s1117_s15 }
 0x1ca   : > { %662 = vrot.lane.b32.xlu1 %v598_v48, %s1118_s16  ;;  %646 = vrot.lane.b32.xlu0 %v601_v56, %s1117_s15 }
 0x1ce   : > { %666 = vrot.lane.b32.xlu1 %v600_v53, %s1118_s16  ;;  %664 = vrot.lane.b32.xlu0 %v599_v55, %s1118_s16 }
 0x1d2   : > { %668 = vrot.lane.b32.xlu0 %v601_v56, %s1118_s16 }
 0x224   : > { %v607_v57 = vpop.permute.xlu1 %606 }
 0x225   : > { %619 = vst.msk [vmem:[#allocation3] sm:$0xff] %vm618_vm5, %v607_v57 }
 0x228   : > { %v611_v58 = vpop.permute.xlu1 %610  ;;  %v609_v59 = vpop.permute.xlu0 %608 }
 0x229   : > { %621 = vst.msk [vmem:[#allocation3 + $0x10] sm:$0xff] %vm618_vm5, %v611_v58  ;;  %620 = vst.msk [vmem:[#allocation3 + $0x8] sm:$0xff] %vm618_vm5, %v609_v59 }
 0x22c   : > { %v624_v60 = vpop.permute.xlu1 %623  ;;  %v613_v61 = vpop.permute.xlu0 %612 }
 0x22d   : > { %636 = vst.msk [vmem:[#allocation3] sm:$0xff] %vm635_vm6, %v624_v60 }
 0x22e   : > { %622 = vst.msk [vmem:[#allocation3 + $0x18] sm:$0xff] %vm618_vm5, %v613_v61 }
 0x230   : > { %v628_v62 = vpop.permute.xlu1 %627  ;;  %v626_v63 = vpop.permute.xlu0 %625 }
 0x231   : > { %638 = vst.msk [vmem:[#allocation3 + $0x10] sm:$0xff] %vm635_vm6, %v628_v62  ;;  %637 = vst.msk [vmem:[#allocation3 + $0x8] sm:$0xff] %vm635_vm6, %v626_v63 }
 0x234   : > { %v641_v0 = vpop.permute.xlu1 %640  ;;  %v630_v1 = vpop.permute.xlu0 %629 }
 0x235   : > { %653 = vst.msk [vmem:[#allocation3] sm:$0xff] %vm652_vm7, %v641_v0 }
 0x236   : > { %639 = vst.msk [vmem:[#allocation3 + $0x18] sm:$0xff] %vm635_vm6, %v630_v1 }
 0x237   : > { %658 = vst.msk [vmem:[#allocation3] sm:$0xff] %vm657_vm8, %v598_v48 }
 0x238   : > { %v645_v2 = vpop.permute.xlu1 %644  ;;  %v643_v3 = vpop.permute.xlu0 %642 }
 0x239   : > { %655 = vst.msk [vmem:[#allocation3 + $0x10] sm:$0xff] %vm652_vm7, %v645_v2  ;;  %654 = vst.msk [vmem:[#allocation3 + $0x8] sm:$0xff] %vm652_vm7, %v643_v3 }
 0x23a   : > { %660 = vst.msk [vmem:[#allocation3 + $0x10] sm:$0xff] %vm657_vm8, %v600_v53  ;;  %659 = vst.msk [vmem:[#allocation3 + $0x8] sm:$0xff] %vm657_vm8, %v599_v55 }
 0x23c   : > { %v663_v4 = vpop.permute.xlu1 %662  ;;  %v647_v5 = vpop.permute.xlu0 %646 }
 0x23d   : > { %675 = vst.msk [vmem:[#allocation3] sm:$0xff] %vm674_vm9, %v663_v4 }
 0x23e   : > { %656 = vst.msk [vmem:[#allocation3 + $0x18] sm:$0xff] %vm652_vm7, %v647_v5 }
 0x23f   : > { %661 = vst.msk [vmem:[#allocation3 + $0x18] sm:$0xff] %vm657_vm8, %v601_v56 }
 0x240   : > { %v667_v6 = vpop.permute.xlu1 %666  ;;  %v665_v7 = vpop.permute.xlu0 %664 }
 0x241   : > { %677 = vst.msk [vmem:[#allocation3 + $0x10] sm:$0xff] %vm674_vm9, %v667_v6  ;;  %676 = vst.msk [vmem:[#allocation3 + $0x8] sm:$0xff] %vm674_vm9, %v665_v7 }
 0x244   : > { %v1269_v8 = vld [vmem:[#allocation3] sm:$0xff]  ;;  %v669_v9 = vpop.permute.xlu0 %668 }
 0x245   : > { %692 = vrot.lane.b32.xlu1 %v1269_v8, %s1116_s14  ;;  %678 = vst.msk [vmem:[#allocation3 + $0x18] sm:$0xff] %vm674_vm9, %v669_v9 }
 0x248   : > { %v1273_v10 = vld [vmem:[#allocation3 + $0x10] sm:$0xff]  ;;  %v1275_v11 = vld [vmem:[#allocation3 + $0x8] sm:$0xff] }
 0x249   : > { %696 = vrot.lane.b32.xlu1 %v1273_v10, %s1116_s14  ;;  %694 = vrot.lane.b32.xlu0 %v1275_v11, %s1116_s14 }
 0x24c   : > { %v1281_v12 = vld [vmem:[#allocation3 + $0x18] sm:$0xff] }
 0x24d   : > { %698 = vrot.lane.b32.xlu0 %v1281_v12, %s1116_s14 }
 0x2b7   : > { %v693_v14 = vpop.permute.xlu1 %692 }
 0x2b8   : > { %v704_v15 = vsel %vm687_vm10, %v1269_v8, %v693_v14 }
 0x2b9   : > { %716 = vrot.lane.b32.xlu1 %v704_v15, %s1108_s28 }
 0x2bb   : > { %v697_v16 = vpop.permute.xlu1 %696  ;;  %v695_v17 = vpop.permute.xlu0 %694 }
 0x2bc   : > { %v706_v18 = vsel %vm687_vm10, %v1273_v10, %v697_v16  ;;  %v705_v19 = vsel %vm687_vm10, %v1275_v11, %v695_v17 }
 0x2bd   : > { %720 = vrot.lane.b32.xlu1 %v706_v18, %s1108_s28  ;;  %718 = vrot.lane.b32.xlu0 %v705_v19, %s1108_s28 }
 0x2bf   : > { %v699_v20 = vpop.permute.xlu0 %698 }
 0x2c0   : > { %v707_v21 = vsel %vm687_vm10, %v1281_v12, %v699_v20 }
 0x2c1   : > { %722 = vrot.lane.b32.xlu0 %v707_v21, %s1108_s28 }
 0x32b   : > { %v717_v23 = vpop.permute.xlu1 %716 }
 0x32c   : > { %v728_v24 = vsel %vm711_vm11, %v1269_v8, %v717_v23 }
 0x32d   : > { %740 = vrot.lane.b32.xlu1 %v728_v24, %s1109_s29 }
 0x32f   : > { %v721_v25 = vpop.permute.xlu1 %720  ;;  %v719_v26 = vpop.permute.xlu0 %718 }
 0x330   : > { %v730_v27 = vsel %vm711_vm11, %v1273_v10, %v721_v25  ;;  %v729_v28 = vsel %vm711_vm11, %v1275_v11, %v719_v26 }
 0x331   : > { %744 = vrot.lane.b32.xlu1 %v730_v27, %s1109_s29  ;;  %742 = vrot.lane.b32.xlu0 %v729_v28, %s1109_s29 }
 0x333   : > { %v723_v29 = vpop.permute.xlu0 %722 }
 0x334   : > { %v731_v30 = vsel %vm711_vm11, %v1281_v12, %v723_v29 }
 0x335   : > { %746 = vrot.lane.b32.xlu0 %v731_v30, %s1109_s29  ;;  %s757_s29 = scalar_select %p756_p13, 1, 0 }
 0x337   : > { %v758_v40 = vstv %s757_s29 }
 0x338   : > { %vm759_vm13 = vcmp.eq.s32.totalorder %v758_v40, 1 }
 0x39f   : > { %v741_v32 = vpop.permute.xlu1 %740 }
 0x3a0   : > { %v752_v33 = vsel %vm735_vm12, %v1269_v8, %v741_v32 }
 0x3a1   : > { %764 = vrot.lane.b32.xlu1 %v752_v33, %s1108_s28 }
 0x3a3   : > { %v745_v34 = vpop.permute.xlu1 %744  ;;  %v743_v35 = vpop.permute.xlu0 %742 }
 0x3a4   : > { %v754_v36 = vsel %vm735_vm12, %v1273_v10, %v745_v34  ;;  %v753_v37 = vsel %vm735_vm12, %v1275_v11, %v743_v35 }
 0x3a5   : > { %768 = vrot.lane.b32.xlu1 %v754_v36, %s1108_s28  ;;  %766 = vrot.lane.b32.xlu0 %v753_v37, %s1108_s28 }
 0x3a7   : > { %v747_v38 = vpop.permute.xlu0 %746 }
 0x3a8   : > { %v755_v39 = vsel %vm735_vm12, %v1281_v12, %v747_v38 }
 0x3a9   : > { %770 = vrot.lane.b32.xlu0 %v755_v39, %s1108_s28 }
 0x413   : > { %v765_v41 = vpop.permute.xlu1 %764 }
 0x414   : > { %v776_v42 = vsel %vm759_vm13, %v1269_v8, %v765_v41 }
 0x415   : > { %780 = vst.msk [vmem:[%s261_s27] sm:$0xff] %vm265_vm0, %v776_v42 }
 0x417   : > { %v769_v43 = vpop.permute.xlu1 %768  ;;  %v767_v44 = vpop.permute.xlu0 %766 }
 0x418   : > { %v778_v45 = vsel %vm759_vm13, %v1273_v10, %v769_v43  ;;  %v777_v46 = vsel %vm759_vm13, %v1275_v11, %v767_v44 }
 0x419   : > { %782 = vst.msk [vmem:[%s261_s27 + $0x10] sm:$0xff] %vm265_vm0, %v778_v45  ;;  %781 = vst.msk [vmem:[%s261_s27 + $0x8] sm:$0xff] %vm265_vm0, %v777_v46 }
 0x41b   : > { %v771_v47 = vpop.permute.xlu0 %770 }
 0x41c   : > { %v779_v48 = vsel %vm759_vm13, %v1281_v12, %v771_v47 }
 0x41d   : > { %783 = vst.msk [vmem:[%s261_s27 + $0x18] sm:$0xff] %vm265_vm0, %v779_v48 }
 0x41e PF: > { %s20_s22 = sadd.s32 1, %s1105_s22   ;;  %s1343_s20 = smov %s1101_s21 }
 0x41f   : > { %p17_p0 = scmp.ge.s32.totalorder %s20_s22, 4   ;;  %s1344_s21 = smov %s1346_s0 }
 0x421   :  { %19 = sbr.rel (!%p17_p0) target bundleno = 17 (0x11), region = 69 }

</bundles_post_ra>
